<compile_context>
chip_gen: v7x
topology: tpu7x:2x2x1
jax: 0.10.0
libtpu: 0.0.40
codegen_flags: <defaults>
</compile_context>

<pallas_src>
import jax
import jax.numpy as jnp
from jax import lax
from jax.experimental import pallas as pl
from jax.experimental.pallas import tpu as pltpu


# ----------------------------- fused Pallas kernel ---------------------------

def _convaein_fused_kernel(xph_ref, we_ref, be_ref, wd_ref, bd_ref, out_ref, z_ref):
    """Fused ConvAEIn forward (kernel_size=3, stride=2).

    xph_ref : (2, 2, B, P, P) f32 VMEM   phase-split padded input,
              xph[r, s, b, u, v] = x_pad[b, 2u + r, 2v + s]
    we_ref  : (nh*9,) f32 SMEM           Conv2d weight, [h, ki, kj] flattened
    be_ref  : (nh,)   f32 SMEM           Conv2d bias
    wd_ref  : (nh*9,) f32 SMEM           ConvTranspose2d weight, [h, di, dj]
    bd_ref  : (1,)    f32 SMEM           ConvTranspose2d bias
    out_ref : (2, 2, B, Ho, Wo) f32 VMEM out[p, q, b, a, c] = y[b, 2a+p, 2c+q]
    z_ref   : (nh, B, Ho+1, Wo+1) f32 VMEM scratch, zero halo at row 0 / col 0
    """
    nh, B = z_ref.shape[0], z_ref.shape[1]
    Ho, Wo = out_ref.shape[3], out_ref.shape[4]

    # Zero the scratch so the decoder's (row 0, col 0) halo reads are 0.
    z_ref[...] = jnp.zeros_like(z_ref)

    # -------- encoder: Conv2d(1, nh, 3, stride=2) + bias + ReLU --------------
    # z1[a,c,h] = relu(be[h] + sum_{ki,kj} x_pad[2a+ki, 2c+kj] * We[h,ki,kj])
    xph = [[xph_ref[r, s] for s in range(2)] for r in range(2)]     # each (B, P, P)
    for h in range(nh):
        acc = jnp.zeros((B, Ho, Wo), jnp.float32)
        for ki in range(3):
            for kj in range(3):
                tap = xph[ki % 2][kj % 2][:, ki // 2:ki // 2 + Ho,
                                             kj // 2:kj // 2 + Wo]
                acc = acc + tap * we_ref[h * 9 + ki * 3 + kj]
        z_ref[h, :, 1:, 1:] = jnp.maximum(acc + be_ref[h], 0.0)

    # -------- decoder: ConvTranspose2d(nh, 1, 3, stride=2) + crop + ReLU -----
    # Sub-pixel (phase) decomposition:
    #   y[2a+p, 2c+q] = relu(bd + sum_h sum_{(di,dj): di%2==p, dj%2==q}
    #                            z1[a - di//2, c - dj//2, h] * Wd[h, di, dj])
    # The a-1 / c-1 accesses read the zero halo of z_ref; the cropped last
    # row/col of the 17x17 transposed-conv output is simply never computed.
    shifted = {}                               # (ro, co) -> per-channel z views
    for ro in (0, 1):                          # ro = 1 - di//2
        for co in (0, 1):                      # co = 1 - dj//2
            shifted[(ro, co)] = [z_ref[h, :, ro:ro + Ho, co:co + Wo]
                                 for h in range(nh)]

    for p in range(2):
        for q in range(2):
            acc = jnp.zeros((B, Ho, Wo), jnp.float32)
            for di in (p, p + 2):
                for dj in (q, q + 2):
                    if di > 2 or dj > 2:
                        continue
                    ro, co = 1 - di // 2, 1 - dj // 2
                    for h in range(nh):
                        acc = acc + shifted[(ro, co)][h] * wd_ref[h * 9 + di * 3 + dj]
            out_ref[p, q] = jnp.maximum(acc + bd_ref[0], 0.0)


# ------------------------------- forward wrapper ------------------------------

@jax.jit
def _forward(x_nchw, we_flat, be, wd_flat, bd):
    B, _, H, W = x_nchw.shape
    nh = be.shape[0]
    Ho, Wo = H // 2, W // 2                                   # conv output size

    # padEncL1 = ZeroPad2d((left=0, right=2, top=0, bottom=2)), in_channels == 1
    x = x_nchw[:, 0].astype(jnp.float32)                      # (B, H, W)
    xpad = jnp.pad(x, ((0, 0), (0, 2), (0, 2)))               # (B, H+2, W+2)
    # Split the padded image into its 4 stride-2 phases:
    #   xph[r, s, b, u, v] = xpad[b, 2u + r, 2v + s]
    xph = jnp.transpose(xpad.reshape(B, Ho + 1, 2, Wo + 1, 2), (2, 4, 0, 1, 3))

    out = pl.pallas_call(
        _convaein_fused_kernel,
        out_shape=jax.ShapeDtypeStruct((2, 2, B, Ho, Wo), jnp.float32),
        in_specs=[
            pl.BlockSpec(memory_space=pltpu.MemorySpace.VMEM),   # input phases
            pl.BlockSpec(memory_space=pltpu.MemorySpace.SMEM),   # enc weight
            pl.BlockSpec(memory_space=pltpu.MemorySpace.SMEM),   # enc bias
            pl.BlockSpec(memory_space=pltpu.MemorySpace.SMEM),   # dec weight
            pl.BlockSpec(memory_space=pltpu.MemorySpace.SMEM),   # dec bias
        ],
        out_specs=pl.BlockSpec(memory_space=pltpu.MemorySpace.VMEM),
        scratch_shapes=[pltpu.VMEM((nh, B, Ho + 1, Wo + 1), jnp.float32)],
    )(xph, we_flat, be, wd_flat, bd)

    # out[p, q, b, a, c] = y[b, 2a+p, 2c+q]  ->  NCHW (B, 1, H, W)
    y = jnp.transpose(out, (2, 3, 0, 4, 1)).reshape(B, H, W)
    return y[:, None, :, :]


class ConvAEInPallas:
    """Pallas re-implementation of ConvAEIn.forward (kernel_size=3, stride=2)."""

    def __init__(self, params, key):
        k = params['kernelSize'][0]
        nh = params['numHidden'][0]
        assert k == 3, "fused phase-decomposition kernel is written for kernel_size=3"
        self.k, self.nh, self.stride = k, nh, 2
        self.batchSize = params['numSubj'] * params['numPerSubj']
        k1, k2, k3, k4 = jax.random.split(key, 4)
        # Deterministic synthetic parameters matching nn.Conv2d / nn.ConvTranspose2d:
        #   encL1.weight: (nh, 1, k, k), encL1.bias: (nh,)
        #   decL1.weight: (nh, 1, k, k), decL1.bias: (1,)
        self.enc_w = jax.random.normal(k1, (nh, 1, k, k), jnp.float32) / jnp.sqrt(1.0 * k * k)
        self.enc_b = 0.01 * jax.random.normal(k2, (nh,), jnp.float32)
        self.dec_w = jax.random.normal(k3, (nh, 1, k, k), jnp.float32) / jnp.sqrt(1.0 * nh * k * k)
        self.dec_b = 0.01 * jax.random.normal(k4, (1,), jnp.float32)
        # Flattened [h, ki, kj] layouts consumed as SMEM scalars by the kernel.
        self.enc_w_flat = self.enc_w.reshape(-1)
        self.dec_w_flat = self.dec_w.reshape(-1)

    def __call__(self, x_nchw):
        return _forward(x_nchw, self.enc_w_flat, self.enc_b,
                        self.dec_w_flat, self.dec_b)


# -------------------------- pure-JAX reference -------------------------------

def reference(x_nchw, model):
    x = jnp.transpose(x_nchw, (0, 2, 3, 1))
    x = jnp.pad(x, ((0, 0), (0, 2), (0, 2), (0, 0)))
    w1 = jnp.transpose(model.enc_w, (2, 3, 1, 0))                     # HWIO
    z1 = lax.conv_general_dilated(x, w1, (2, 2), 'VALID',
                                  dimension_numbers=('NHWC', 'HWIO', 'NHWC'))
    z1 = jax.nn.relu(z1 + model.enc_b)
    wt = jnp.transpose(model.dec_w[:, :, ::-1, ::-1], (2, 3, 0, 1))   # HWIO (I=nh, O=1)
    y = lax.conv_general_dilated(z1, wt, (1, 1),
                                 [(model.k - 1, model.k - 1)] * 2,
                                 lhs_dilation=(2, 2),
                                 dimension_numbers=('NHWC', 'HWIO', 'NHWC'))
    y = (y + model.dec_b)[:, :-1, :-1, :]
    y = jax.nn.relu(y)
    return jnp.transpose(y, (0, 3, 1, 2))


# ----------------------------------- main ------------------------------------

if __name__ == "__main__":
    params = {'kernelSize': [3], 'numHidden': [4], 'numSubj': 2, 'numPerSubj': 1}
    key = jax.random.PRNGKey(0)
    kx, kp = jax.random.split(key)
    model = ConvAEInPallas(params, kp)
    B = params['numSubj'] * params['numPerSubj']
    x = jax.random.normal(kx, (B, 1, 16, 16), jnp.float32)            # NCHW like PyTorch

    out = model(x)
    out = jax.block_until_ready(out)
    assert out.shape == (B, 1, 16, 16), out.shape

    ref = reference(x, model)
    assert jnp.allclose(out, ref, atol=1e-4, rtol=1e-4), float(jnp.max(jnp.abs(out - ref)))
    print("KERNEL_OK")
</pallas_src>

<mosaic_0001>
module attributes {stable_mosaic.version = 11 : i64} {
  func.func @_convaein_fused_kernel(%arg0: memref<2x2x2x9x9xf32, #tpu.memory_space<vmem>>, %arg1: memref<36xf32, #tpu.memory_space<smem>>, %arg2: memref<4xf32, #tpu.memory_space<smem>>, %arg3: memref<36xf32, #tpu.memory_space<smem>>, %arg4: memref<1xf32, #tpu.memory_space<smem>>, %arg5: memref<2x2x2x8x8xf32, #tpu.memory_space<vmem>>, %arg6: memref<4x2x9x9xf32, #tpu.memory_space<vmem>>) attributes {dimension_semantics = [], scalar_prefetch = 0 : i64, scratch_operands = 1 : i64, tpu.core_type = #tpu.core_type<tc>} {
    %cst = arith.constant 0.000000e+00 : f32
    %0 = vector.broadcast %cst : f32 to vector<4x2x9x9xf32>
    %c0 = arith.constant 0 : index
    %c0_0 = arith.constant 0 : index
    %c0_1 = arith.constant 0 : index
    %c0_2 = arith.constant 0 : index
    %1 = vector.load %arg6[%c0, %c0_0, %c0_1, %c0_2] : memref<4x2x9x9xf32, #tpu.memory_space<vmem>>, vector<4x2x9x9xf32>
    tpu.vector_store %arg6[%c0, %c0_0, %c0_1, %c0_2], %0 {strides = array<i32>} : memref<4x2x9x9xf32, #tpu.memory_space<vmem>>, vector<4x2x9x9xf32>,
    %c0_3 = arith.constant 0 : index
    %c0_4 = arith.constant 0 : index
    %c0_5 = arith.constant 0 : index
    %c0_6 = arith.constant 0 : index
    %c0_7 = arith.constant 0 : index
    %2 = vector.load %arg0[%c0_3, %c0_4, %c0_5, %c0_6, %c0_7] : memref<2x2x2x9x9xf32, #tpu.memory_space<vmem>>, vector<1x1x2x9x9xf32>
    %3 = vector.shape_cast %2 : vector<1x1x2x9x9xf32> to vector<2x9x9xf32>
    %c0_8 = arith.constant 0 : index
    %c1 = arith.constant 1 : index
    %c0_9 = arith.constant 0 : index
    %c0_10 = arith.constant 0 : index
    %c0_11 = arith.constant 0 : index
    %4 = vector.load %arg0[%c0_8, %c1, %c0_9, %c0_10, %c0_11] : memref<2x2x2x9x9xf32, #tpu.memory_space<vmem>>, vector<1x1x2x9x9xf32>
    %5 = vector.shape_cast %4 : vector<1x1x2x9x9xf32> to vector<2x9x9xf32>
    %c1_12 = arith.constant 1 : index
    %c0_13 = arith.constant 0 : index
    %c0_14 = arith.constant 0 : index
    %c0_15 = arith.constant 0 : index
    %c0_16 = arith.constant 0 : index
    %6 = vector.load %arg0[%c1_12, %c0_13, %c0_14, %c0_15, %c0_16] : memref<2x2x2x9x9xf32, #tpu.memory_space<vmem>>, vector<1x1x2x9x9xf32>
    %7 = vector.shape_cast %6 : vector<1x1x2x9x9xf32> to vector<2x9x9xf32>
    %c1_17 = arith.constant 1 : index
    %c1_18 = arith.constant 1 : index
    %c0_19 = arith.constant 0 : index
    %c0_20 = arith.constant 0 : index
    %c0_21 = arith.constant 0 : index
    %8 = vector.load %arg0[%c1_17, %c1_18, %c0_19, %c0_20, %c0_21] : memref<2x2x2x9x9xf32, #tpu.memory_space<vmem>>, vector<1x1x2x9x9xf32>
    %9 = vector.shape_cast %8 : vector<1x1x2x9x9xf32> to vector<2x9x9xf32>
    %cst_22 = arith.constant 0.000000e+00 : f32
    %10 = vector.broadcast %cst_22 : f32 to vector<2x8x8xf32>
    %11 = vector.extract_strided_slice %3 {offsets = [0, 0, 0], sizes = [2, 8, 8], strides = [1, 1, 1]} : vector<2x9x9xf32> to vector<2x8x8xf32>
    %c0_23 = arith.constant 0 : index
    %12 = memref.load %arg1[%c0_23] : memref<36xf32, #tpu.memory_space<smem>>
    %13 = vector.broadcast %12 : f32 to vector<2x8x8xf32>
    %14 = arith.mulf %11, %13 : vector<2x8x8xf32>
    %15 = arith.addf %10, %14 : vector<2x8x8xf32>
    %16 = vector.extract_strided_slice %5 {offsets = [0, 0, 0], sizes = [2, 8, 8], strides = [1, 1, 1]} : vector<2x9x9xf32> to vector<2x8x8xf32>
    %c1_24 = arith.constant 1 : index
    %17 = memref.load %arg1[%c1_24] : memref<36xf32, #tpu.memory_space<smem>>
    %18 = vector.broadcast %17 : f32 to vector<2x8x8xf32>
    %19 = arith.mulf %16, %18 : vector<2x8x8xf32>
    %20 = arith.addf %15, %19 : vector<2x8x8xf32>
    %21 = vector.extract_strided_slice %3 {offsets = [0, 0, 1], sizes = [2, 8, 8], strides = [1, 1, 1]} : vector<2x9x9xf32> to vector<2x8x8xf32>
    %c2 = arith.constant 2 : index
    %22 = memref.load %arg1[%c2] : memref<36xf32, #tpu.memory_space<smem>>
    %23 = vector.broadcast %22 : f32 to vector<2x8x8xf32>
    %24 = arith.mulf %21, %23 : vector<2x8x8xf32>
    %25 = arith.addf %20, %24 : vector<2x8x8xf32>
    %26 = vector.extract_strided_slice %7 {offsets = [0, 0, 0], sizes = [2, 8, 8], strides = [1, 1, 1]} : vector<2x9x9xf32> to vector<2x8x8xf32>
    %c3 = arith.constant 3 : index
    %27 = memref.load %arg1[%c3] : memref<36xf32, #tpu.memory_space<smem>>
    %28 = vector.broadcast %27 : f32 to vector<2x8x8xf32>
    %29 = arith.mulf %26, %28 : vector<2x8x8xf32>
    %30 = arith.addf %25, %29 : vector<2x8x8xf32>
    %31 = vector.extract_strided_slice %9 {offsets = [0, 0, 0], sizes = [2, 8, 8], strides = [1, 1, 1]} : vector<2x9x9xf32> to vector<2x8x8xf32>
    %c4 = arith.constant 4 : index
    %32 = memref.load %arg1[%c4] : memref<36xf32, #tpu.memory_space<smem>>
    %33 = vector.broadcast %32 : f32 to vector<2x8x8xf32>
    %34 = arith.mulf %31, %33 : vector<2x8x8xf32>
    %35 = arith.addf %30, %34 : vector<2x8x8xf32>
    %36 = vector.extract_strided_slice %7 {offsets = [0, 0, 1], sizes = [2, 8, 8], strides = [1, 1, 1]} : vector<2x9x9xf32> to vector<2x8x8xf32>
    %c5 = arith.constant 5 : index
    %37 = memref.load %arg1[%c5] : memref<36xf32, #tpu.memory_space<smem>>
    %38 = vector.broadcast %37 : f32 to vector<2x8x8xf32>
    %39 = arith.mulf %36, %38 : vector<2x8x8xf32>
    %40 = arith.addf %35, %39 : vector<2x8x8xf32>
    %41 = vector.extract_strided_slice %3 {offsets = [0, 1, 0], sizes = [2, 8, 8], strides = [1, 1, 1]} : vector<2x9x9xf32> to vector<2x8x8xf32>
    %c6 = arith.constant 6 : index
    %42 = memref.load %arg1[%c6] : memref<36xf32, #tpu.memory_space<smem>>
    %43 = vector.broadcast %42 : f32 to vector<2x8x8xf32>
    %44 = arith.mulf %41, %43 : vector<2x8x8xf32>
    %45 = arith.addf %40, %44 : vector<2x8x8xf32>
    %46 = vector.extract_strided_slice %5 {offsets = [0, 1, 0], sizes = [2, 8, 8], strides = [1, 1, 1]} : vector<2x9x9xf32> to vector<2x8x8xf32>
    %c7 = arith.constant 7 : index
    %47 = memref.load %arg1[%c7] : memref<36xf32, #tpu.memory_space<smem>>
    %48 = vector.broadcast %47 : f32 to vector<2x8x8xf32>
    %49 = arith.mulf %46, %48 : vector<2x8x8xf32>
    %50 = arith.addf %45, %49 : vector<2x8x8xf32>
    %51 = vector.extract_strided_slice %3 {offsets = [0, 1, 1], sizes = [2, 8, 8], strides = [1, 1, 1]} : vector<2x9x9xf32> to vector<2x8x8xf32>
    %c8 = arith.constant 8 : index
    %52 = memref.load %arg1[%c8] : memref<36xf32, #tpu.memory_space<smem>>
    %53 = vector.broadcast %52 : f32 to vector<2x8x8xf32>
    %54 = arith.mulf %51, %53 : vector<2x8x8xf32>
    %55 = arith.addf %50, %54 : vector<2x8x8xf32>
    %c0_25 = arith.constant 0 : index
    %56 = memref.load %arg2[%c0_25] : memref<4xf32, #tpu.memory_space<smem>>
    %57 = vector.broadcast %56 : f32 to vector<2x8x8xf32>
    %58 = arith.addf %55, %57 : vector<2x8x8xf32>
    %cst_26 = arith.constant 0.000000e+00 : f32
    %59 = vector.broadcast %cst_26 : f32 to vector<2x8x8xf32>
    %60 = arith.maximumf %58, %59 : vector<2x8x8xf32>
    %c0_27 = arith.constant 0 : index
    %c0_28 = arith.constant 0 : index
    %c1_29 = arith.constant 1 : index
    %c1_30 = arith.constant 1 : index
    %61 = vector.load %arg6[%c0_27, %c0_28, %c1_29, %c1_30] : memref<4x2x9x9xf32, #tpu.memory_space<vmem>>, vector<1x2x8x8xf32>
    %62 = vector.shape_cast %61 : vector<1x2x8x8xf32> to vector<2x8x8xf32>
    %63 = vector.shape_cast %60 : vector<2x8x8xf32> to vector<1x2x8x8xf32>
    tpu.vector_store %arg6[%c0_27, %c0_28, %c1_29, %c1_30], %63 {strides = array<i32>} : memref<4x2x9x9xf32, #tpu.memory_space<vmem>>, vector<1x2x8x8xf32>,
    %cst_31 = arith.constant 0.000000e+00 : f32
    %64 = vector.broadcast %cst_31 : f32 to vector<2x8x8xf32>
    %65 = vector.extract_strided_slice %3 {offsets = [0, 0, 0], sizes = [2, 8, 8], strides = [1, 1, 1]} : vector<2x9x9xf32> to vector<2x8x8xf32>
    %c9 = arith.constant 9 : index
    %66 = memref.load %arg1[%c9] : memref<36xf32, #tpu.memory_space<smem>>
    %67 = vector.broadcast %66 : f32 to vector<2x8x8xf32>
    %68 = arith.mulf %65, %67 : vector<2x8x8xf32>
    %69 = arith.addf %64, %68 : vector<2x8x8xf32>
    %70 = vector.extract_strided_slice %5 {offsets = [0, 0, 0], sizes = [2, 8, 8], strides = [1, 1, 1]} : vector<2x9x9xf32> to vector<2x8x8xf32>
    %c10 = arith.constant 10 : index
    %71 = memref.load %arg1[%c10] : memref<36xf32, #tpu.memory_space<smem>>
    %72 = vector.broadcast %71 : f32 to vector<2x8x8xf32>
    %73 = arith.mulf %70, %72 : vector<2x8x8xf32>
    %74 = arith.addf %69, %73 : vector<2x8x8xf32>
    %75 = vector.extract_strided_slice %3 {offsets = [0, 0, 1], sizes = [2, 8, 8], strides = [1, 1, 1]} : vector<2x9x9xf32> to vector<2x8x8xf32>
    %c11 = arith.constant 11 : index
    %76 = memref.load %arg1[%c11] : memref<36xf32, #tpu.memory_space<smem>>
    %77 = vector.broadcast %76 : f32 to vector<2x8x8xf32>
    %78 = arith.mulf %75, %77 : vector<2x8x8xf32>
    %79 = arith.addf %74, %78 : vector<2x8x8xf32>
    %80 = vector.extract_strided_slice %7 {offsets = [0, 0, 0], sizes = [2, 8, 8], strides = [1, 1, 1]} : vector<2x9x9xf32> to vector<2x8x8xf32>
    %c12 = arith.constant 12 : index
    %81 = memref.load %arg1[%c12] : memref<36xf32, #tpu.memory_space<smem>>
    %82 = vector.broadcast %81 : f32 to vector<2x8x8xf32>
    %83 = arith.mulf %80, %82 : vector<2x8x8xf32>
    %84 = arith.addf %79, %83 : vector<2x8x8xf32>
    %85 = vector.extract_strided_slice %9 {offsets = [0, 0, 0], sizes = [2, 8, 8], strides = [1, 1, 1]} : vector<2x9x9xf32> to vector<2x8x8xf32>
    %c13 = arith.constant 13 : index
    %86 = memref.load %arg1[%c13] : memref<36xf32, #tpu.memory_space<smem>>
    %87 = vector.broadcast %86 : f32 to vector<2x8x8xf32>
    %88 = arith.mulf %85, %87 : vector<2x8x8xf32>
    %89 = arith.addf %84, %88 : vector<2x8x8xf32>
    %90 = vector.extract_strided_slice %7 {offsets = [0, 0, 1], sizes = [2, 8, 8], strides = [1, 1, 1]} : vector<2x9x9xf32> to vector<2x8x8xf32>
    %c14 = arith.constant 14 : index
    %91 = memref.load %arg1[%c14] : memref<36xf32, #tpu.memory_space<smem>>
    %92 = vector.broadcast %91 : f32 to vector<2x8x8xf32>
    %93 = arith.mulf %90, %92 : vector<2x8x8xf32>
    %94 = arith.addf %89, %93 : vector<2x8x8xf32>
    %95 = vector.extract_strided_slice %3 {offsets = [0, 1, 0], sizes = [2, 8, 8], strides = [1, 1, 1]} : vector<2x9x9xf32> to vector<2x8x8xf32>
    %c15 = arith.constant 15 : index
    %96 = memref.load %arg1[%c15] : memref<36xf32, #tpu.memory_space<smem>>
    %97 = vector.broadcast %96 : f32 to vector<2x8x8xf32>
    %98 = arith.mulf %95, %97 : vector<2x8x8xf32>
    %99 = arith.addf %94, %98 : vector<2x8x8xf32>
    %100 = vector.extract_strided_slice %5 {offsets = [0, 1, 0], sizes = [2, 8, 8], strides = [1, 1, 1]} : vector<2x9x9xf32> to vector<2x8x8xf32>
    %c16 = arith.constant 16 : index
    %101 = memref.load %arg1[%c16] : memref<36xf32, #tpu.memory_space<smem>>
    %102 = vector.broadcast %101 : f32 to vector<2x8x8xf32>
    %103 = arith.mulf %100, %102 : vector<2x8x8xf32>
    %104 = arith.addf %99, %103 : vector<2x8x8xf32>
    %105 = vector.extract_strided_slice %3 {offsets = [0, 1, 1], sizes = [2, 8, 8], strides = [1, 1, 1]} : vector<2x9x9xf32> to vector<2x8x8xf32>
    %c17 = arith.constant 17 : index
    %106 = memref.load %arg1[%c17] : memref<36xf32, #tpu.memory_space<smem>>
    %107 = vector.broadcast %106 : f32 to vector<2x8x8xf32>
    %108 = arith.mulf %105, %107 : vector<2x8x8xf32>
    %109 = arith.addf %104, %108 : vector<2x8x8xf32>
    %c1_32 = arith.constant 1 : index
    %110 = memref.load %arg2[%c1_32] : memref<4xf32, #tpu.memory_space<smem>>
    %111 = vector.broadcast %110 : f32 to vector<2x8x8xf32>
    %112 = arith.addf %109, %111 : vector<2x8x8xf32>
    %cst_33 = arith.constant 0.000000e+00 : f32
    %113 = vector.broadcast %cst_33 : f32 to vector<2x8x8xf32>
    %114 = arith.maximumf %112, %113 : vector<2x8x8xf32>
    %c1_34 = arith.constant 1 : index
    %c0_35 = arith.constant 0 : index
    %c1_36 = arith.constant 1 : index
    %c1_37 = arith.constant 1 : index
    %115 = vector.load %arg6[%c1_34, %c0_35, %c1_36, %c1_37] : memref<4x2x9x9xf32, #tpu.memory_space<vmem>>, vector<1x2x8x8xf32>
    %116 = vector.shape_cast %115 : vector<1x2x8x8xf32> to vector<2x8x8xf32>
    %117 = vector.shape_cast %114 : vector<2x8x8xf32> to vector<1x2x8x8xf32>
    tpu.vector_store %arg6[%c1_34, %c0_35, %c1_36, %c1_37], %117 {strides = array<i32>} : memref<4x2x9x9xf32, #tpu.memory_space<vmem>>, vector<1x2x8x8xf32>,
    %cst_38 = arith.constant 0.000000e+00 : f32
    %118 = vector.broadcast %cst_38 : f32 to vector<2x8x8xf32>
    %119 = vector.extract_strided_slice %3 {offsets = [0, 0, 0], sizes = [2, 8, 8], strides = [1, 1, 1]} : vector<2x9x9xf32> to vector<2x8x8xf32>
    %c18 = arith.constant 18 : index
    %120 = memref.load %arg1[%c18] : memref<36xf32, #tpu.memory_space<smem>>
    %121 = vector.broadcast %120 : f32 to vector<2x8x8xf32>
    %122 = arith.mulf %119, %121 : vector<2x8x8xf32>
    %123 = arith.addf %118, %122 : vector<2x8x8xf32>
    %124 = vector.extract_strided_slice %5 {offsets = [0, 0, 0], sizes = [2, 8, 8], strides = [1, 1, 1]} : vector<2x9x9xf32> to vector<2x8x8xf32>
    %c19 = arith.constant 19 : index
    %125 = memref.load %arg1[%c19] : memref<36xf32, #tpu.memory_space<smem>>
    %126 = vector.broadcast %125 : f32 to vector<2x8x8xf32>
    %127 = arith.mulf %124, %126 : vector<2x8x8xf32>
    %128 = arith.addf %123, %127 : vector<2x8x8xf32>
    %129 = vector.extract_strided_slice %3 {offsets = [0, 0, 1], sizes = [2, 8, 8], strides = [1, 1, 1]} : vector<2x9x9xf32> to vector<2x8x8xf32>
    %c20 = arith.constant 20 : index
    %130 = memref.load %arg1[%c20] : memref<36xf32, #tpu.memory_space<smem>>
    %131 = vector.broadcast %130 : f32 to vector<2x8x8xf32>
    %132 = arith.mulf %129, %131 : vector<2x8x8xf32>
    %133 = arith.addf %128, %132 : vector<2x8x8xf32>
    %134 = vector.extract_strided_slice %7 {offsets = [0, 0, 0], sizes = [2, 8, 8], strides = [1, 1, 1]} : vector<2x9x9xf32> to vector<2x8x8xf32>
    %c21 = arith.constant 21 : index
    %135 = memref.load %arg1[%c21] : memref<36xf32, #tpu.memory_space<smem>>
    %136 = vector.broadcast %135 : f32 to vector<2x8x8xf32>
    %137 = arith.mulf %134, %136 : vector<2x8x8xf32>
    %138 = arith.addf %133, %137 : vector<2x8x8xf32>
    %139 = vector.extract_strided_slice %9 {offsets = [0, 0, 0], sizes = [2, 8, 8], strides = [1, 1, 1]} : vector<2x9x9xf32> to vector<2x8x8xf32>
    %c22 = arith.constant 22 : index
    %140 = memref.load %arg1[%c22] : memref<36xf32, #tpu.memory_space<smem>>
    %141 = vector.broadcast %140 : f32 to vector<2x8x8xf32>
    %142 = arith.mulf %139, %141 : vector<2x8x8xf32>
    %143 = arith.addf %138, %142 : vector<2x8x8xf32>
    %144 = vector.extract_strided_slice %7 {offsets = [0, 0, 1], sizes = [2, 8, 8], strides = [1, 1, 1]} : vector<2x9x9xf32> to vector<2x8x8xf32>
    %c23 = arith.constant 23 : index
    %145 = memref.load %arg1[%c23] : memref<36xf32, #tpu.memory_space<smem>>
    %146 = vector.broadcast %145 : f32 to vector<2x8x8xf32>
    %147 = arith.mulf %144, %146 : vector<2x8x8xf32>
    %148 = arith.addf %143, %147 : vector<2x8x8xf32>
    %149 = vector.extract_strided_slice %3 {offsets = [0, 1, 0], sizes = [2, 8, 8], strides = [1, 1, 1]} : vector<2x9x9xf32> to vector<2x8x8xf32>
    %c24 = arith.constant 24 : index
    %150 = memref.load %arg1[%c24] : memref<36xf32, #tpu.memory_space<smem>>
    %151 = vector.broadcast %150 : f32 to vector<2x8x8xf32>
    %152 = arith.mulf %149, %151 : vector<2x8x8xf32>
    %153 = arith.addf %148, %152 : vector<2x8x8xf32>
    %154 = vector.extract_strided_slice %5 {offsets = [0, 1, 0], sizes = [2, 8, 8], strides = [1, 1, 1]} : vector<2x9x9xf32> to vector<2x8x8xf32>
    %c25 = arith.constant 25 : index
    %155 = memref.load %arg1[%c25] : memref<36xf32, #tpu.memory_space<smem>>
    %156 = vector.broadcast %155 : f32 to vector<2x8x8xf32>
    %157 = arith.mulf %154, %156 : vector<2x8x8xf32>
    %158 = arith.addf %153, %157 : vector<2x8x8xf32>
    %159 = vector.extract_strided_slice %3 {offsets = [0, 1, 1], sizes = [2, 8, 8], strides = [1, 1, 1]} : vector<2x9x9xf32> to vector<2x8x8xf32>
    %c26 = arith.constant 26 : index
    %160 = memref.load %arg1[%c26] : memref<36xf32, #tpu.memory_space<smem>>
    %161 = vector.broadcast %160 : f32 to vector<2x8x8xf32>
    %162 = arith.mulf %159, %161 : vector<2x8x8xf32>
    %163 = arith.addf %158, %162 : vector<2x8x8xf32>
    %c2_39 = arith.constant 2 : index
    %164 = memref.load %arg2[%c2_39] : memref<4xf32, #tpu.memory_space<smem>>
    %165 = vector.broadcast %164 : f32 to vector<2x8x8xf32>
    %166 = arith.addf %163, %165 : vector<2x8x8xf32>
    %cst_40 = arith.constant 0.000000e+00 : f32
    %167 = vector.broadcast %cst_40 : f32 to vector<2x8x8xf32>
    %168 = arith.maximumf %166, %167 : vector<2x8x8xf32>
    %c2_41 = arith.constant 2 : index
    %c0_42 = arith.constant 0 : index
    %c1_43 = arith.constant 1 : index
    %c1_44 = arith.constant 1 : index
    %169 = vector.load %arg6[%c2_41, %c0_42, %c1_43, %c1_44] : memref<4x2x9x9xf32, #tpu.memory_space<vmem>>, vector<1x2x8x8xf32>
    %170 = vector.shape_cast %169 : vector<1x2x8x8xf32> to vector<2x8x8xf32>
    %171 = vector.shape_cast %168 : vector<2x8x8xf32> to vector<1x2x8x8xf32>
    tpu.vector_store %arg6[%c2_41, %c0_42, %c1_43, %c1_44], %171 {strides = array<i32>} : memref<4x2x9x9xf32, #tpu.memory_space<vmem>>, vector<1x2x8x8xf32>,
    %cst_45 = arith.constant 0.000000e+00 : f32
    %172 = vector.broadcast %cst_45 : f32 to vector<2x8x8xf32>
    %173 = vector.extract_strided_slice %3 {offsets = [0, 0, 0], sizes = [2, 8, 8], strides = [1, 1, 1]} : vector<2x9x9xf32> to vector<2x8x8xf32>
    %c27 = arith.constant 27 : index
    %174 = memref.load %arg1[%c27] : memref<36xf32, #tpu.memory_space<smem>>
    %175 = vector.broadcast %174 : f32 to vector<2x8x8xf32>
    %176 = arith.mulf %173, %175 : vector<2x8x8xf32>
    %177 = arith.addf %172, %176 : vector<2x8x8xf32>
    %178 = vector.extract_strided_slice %5 {offsets = [0, 0, 0], sizes = [2, 8, 8], strides = [1, 1, 1]} : vector<2x9x9xf32> to vector<2x8x8xf32>
    %c28 = arith.constant 28 : index
    %179 = memref.load %arg1[%c28] : memref<36xf32, #tpu.memory_space<smem>>
    %180 = vector.broadcast %179 : f32 to vector<2x8x8xf32>
    %181 = arith.mulf %178, %180 : vector<2x8x8xf32>
    %182 = arith.addf %177, %181 : vector<2x8x8xf32>
    %183 = vector.extract_strided_slice %3 {offsets = [0, 0, 1], sizes = [2, 8, 8], strides = [1, 1, 1]} : vector<2x9x9xf32> to vector<2x8x8xf32>
    %c29 = arith.constant 29 : index
    %184 = memref.load %arg1[%c29] : memref<36xf32, #tpu.memory_space<smem>>
    %185 = vector.broadcast %184 : f32 to vector<2x8x8xf32>
    %186 = arith.mulf %183, %185 : vector<2x8x8xf32>
    %187 = arith.addf %182, %186 : vector<2x8x8xf32>
    %188 = vector.extract_strided_slice %7 {offsets = [0, 0, 0], sizes = [2, 8, 8], strides = [1, 1, 1]} : vector<2x9x9xf32> to vector<2x8x8xf32>
    %c30 = arith.constant 30 : index
    %189 = memref.load %arg1[%c30] : memref<36xf32, #tpu.memory_space<smem>>
    %190 = vector.broadcast %189 : f32 to vector<2x8x8xf32>
    %191 = arith.mulf %188, %190 : vector<2x8x8xf32>
    %192 = arith.addf %187, %191 : vector<2x8x8xf32>
    %193 = vector.extract_strided_slice %9 {offsets = [0, 0, 0], sizes = [2, 8, 8], strides = [1, 1, 1]} : vector<2x9x9xf32> to vector<2x8x8xf32>
    %c31 = arith.constant 31 : index
    %194 = memref.load %arg1[%c31] : memref<36xf32, #tpu.memory_space<smem>>
    %195 = vector.broadcast %194 : f32 to vector<2x8x8xf32>
    %196 = arith.mulf %193, %195 : vector<2x8x8xf32>
    %197 = arith.addf %192, %196 : vector<2x8x8xf32>
    %198 = vector.extract_strided_slice %7 {offsets = [0, 0, 1], sizes = [2, 8, 8], strides = [1, 1, 1]} : vector<2x9x9xf32> to vector<2x8x8xf32>
    %c32 = arith.constant 32 : index
    %199 = memref.load %arg1[%c32] : memref<36xf32, #tpu.memory_space<smem>>
    %200 = vector.broadcast %199 : f32 to vector<2x8x8xf32>
    %201 = arith.mulf %198, %200 : vector<2x8x8xf32>
    %202 = arith.addf %197, %201 : vector<2x8x8xf32>
    %203 = vector.extract_strided_slice %3 {offsets = [0, 1, 0], sizes = [2, 8, 8], strides = [1, 1, 1]} : vector<2x9x9xf32> to vector<2x8x8xf32>
    %c33 = arith.constant 33 : index
    %204 = memref.load %arg1[%c33] : memref<36xf32, #tpu.memory_space<smem>>
    %205 = vector.broadcast %204 : f32 to vector<2x8x8xf32>
    %206 = arith.mulf %203, %205 : vector<2x8x8xf32>
    %207 = arith.addf %202, %206 : vector<2x8x8xf32>
    %208 = vector.extract_strided_slice %5 {offsets = [0, 1, 0], sizes = [2, 8, 8], strides = [1, 1, 1]} : vector<2x9x9xf32> to vector<2x8x8xf32>
    %c34 = arith.constant 34 : index
    %209 = memref.load %arg1[%c34] : memref<36xf32, #tpu.memory_space<smem>>
    %210 = vector.broadcast %209 : f32 to vector<2x8x8xf32>
    %211 = arith.mulf %208, %210 : vector<2x8x8xf32>
    %212 = arith.addf %207, %211 : vector<2x8x8xf32>
    %213 = vector.extract_strided_slice %3 {offsets = [0, 1, 1], sizes = [2, 8, 8], strides = [1, 1, 1]} : vector<2x9x9xf32> to vector<2x8x8xf32>
    %c35 = arith.constant 35 : index
    %214 = memref.load %arg1[%c35] : memref<36xf32, #tpu.memory_space<smem>>
    %215 = vector.broadcast %214 : f32 to vector<2x8x8xf32>
    %216 = arith.mulf %213, %215 : vector<2x8x8xf32>
    %217 = arith.addf %212, %216 : vector<2x8x8xf32>
    %c3_46 = arith.constant 3 : index
    %218 = memref.load %arg2[%c3_46] : memref<4xf32, #tpu.memory_space<smem>>
    %219 = vector.broadcast %218 : f32 to vector<2x8x8xf32>
    %220 = arith.addf %217, %219 : vector<2x8x8xf32>
    %cst_47 = arith.constant 0.000000e+00 : f32
    %221 = vector.broadcast %cst_47 : f32 to vector<2x8x8xf32>
    %222 = arith.maximumf %220, %221 : vector<2x8x8xf32>
    %c3_48 = arith.constant 3 : index
    %c0_49 = arith.constant 0 : index
    %c1_50 = arith.constant 1 : index
    %c1_51 = arith.constant 1 : index
    %223 = vector.load %arg6[%c3_48, %c0_49, %c1_50, %c1_51] : memref<4x2x9x9xf32, #tpu.memory_space<vmem>>, vector<1x2x8x8xf32>
    %224 = vector.shape_cast %223 : vector<1x2x8x8xf32> to vector<2x8x8xf32>
    %225 = vector.shape_cast %222 : vector<2x8x8xf32> to vector<1x2x8x8xf32>
    tpu.vector_store %arg6[%c3_48, %c0_49, %c1_50, %c1_51], %225 {strides = array<i32>} : memref<4x2x9x9xf32, #tpu.memory_space<vmem>>, vector<1x2x8x8xf32>,
    %c0_52 = arith.constant 0 : index
    %c0_53 = arith.constant 0 : index
    %c0_54 = arith.constant 0 : index
    %c0_55 = arith.constant 0 : index
    %226 = vector.load %arg6[%c0_52, %c0_53, %c0_54, %c0_55] : memref<4x2x9x9xf32, #tpu.memory_space<vmem>>, vector<1x2x8x8xf32>
    %227 = vector.shape_cast %226 : vector<1x2x8x8xf32> to vector<2x8x8xf32>
    %c1_56 = arith.constant 1 : index
    %c0_57 = arith.constant 0 : index
    %c0_58 = arith.constant 0 : index
    %c0_59 = arith.constant 0 : index
    %228 = vector.load %arg6[%c1_56, %c0_57, %c0_58, %c0_59] : memref<4x2x9x9xf32, #tpu.memory_space<vmem>>, vector<1x2x8x8xf32>
    %229 = vector.shape_cast %228 : vector<1x2x8x8xf32> to vector<2x8x8xf32>
    %c2_60 = arith.constant 2 : index
    %c0_61 = arith.constant 0 : index
    %c0_62 = arith.constant 0 : index
    %c0_63 = arith.constant 0 : index
    %230 = vector.load %arg6[%c2_60, %c0_61, %c0_62, %c0_63] : memref<4x2x9x9xf32, #tpu.memory_space<vmem>>, vector<1x2x8x8xf32>
    %231 = vector.shape_cast %230 : vector<1x2x8x8xf32> to vector<2x8x8xf32>
    %c3_64 = arith.constant 3 : index
    %c0_65 = arith.constant 0 : index
    %c0_66 = arith.constant 0 : index
    %c0_67 = arith.constant 0 : index
    %232 = vector.load %arg6[%c3_64, %c0_65, %c0_66, %c0_67] : memref<4x2x9x9xf32, #tpu.memory_space<vmem>>, vector<1x2x8x8xf32>
    %233 = vector.shape_cast %232 : vector<1x2x8x8xf32> to vector<2x8x8xf32>
    %c0_68 = arith.constant 0 : index
    %c0_69 = arith.constant 0 : index
    %c0_70 = arith.constant 0 : index
    %c1_71 = arith.constant 1 : index
    %234 = vector.load %arg6[%c0_68, %c0_69, %c0_70, %c1_71] : memref<4x2x9x9xf32, #tpu.memory_space<vmem>>, vector<1x2x8x8xf32>
    %235 = vector.shape_cast %234 : vector<1x2x8x8xf32> to vector<2x8x8xf32>
    %c1_72 = arith.constant 1 : index
    %c0_73 = arith.constant 0 : index
    %c0_74 = arith.constant 0 : index
    %c1_75 = arith.constant 1 : index
    %236 = vector.load %arg6[%c1_72, %c0_73, %c0_74, %c1_75] : memref<4x2x9x9xf32, #tpu.memory_space<vmem>>, vector<1x2x8x8xf32>
    %237 = vector.shape_cast %236 : vector<1x2x8x8xf32> to vector<2x8x8xf32>
    %c2_76 = arith.constant 2 : index
    %c0_77 = arith.constant 0 : index
    %c0_78 = arith.constant 0 : index
    %c1_79 = arith.constant 1 : index
    %238 = vector.load %arg6[%c2_76, %c0_77, %c0_78, %c1_79] : memref<4x2x9x9xf32, #tpu.memory_space<vmem>>, vector<1x2x8x8xf32>
    %239 = vector.shape_cast %238 : vector<1x2x8x8xf32> to vector<2x8x8xf32>
    %c3_80 = arith.constant 3 : index
    %c0_81 = arith.constant 0 : index
    %c0_82 = arith.constant 0 : index
    %c1_83 = arith.constant 1 : index
    %240 = vector.load %arg6[%c3_80, %c0_81, %c0_82, %c1_83] : memref<4x2x9x9xf32, #tpu.memory_space<vmem>>, vector<1x2x8x8xf32>
    %241 = vector.shape_cast %240 : vector<1x2x8x8xf32> to vector<2x8x8xf32>
    %c0_84 = arith.constant 0 : index
    %c0_85 = arith.constant 0 : index
    %c1_86 = arith.constant 1 : index
    %c0_87 = arith.constant 0 : index
    %242 = vector.load %arg6[%c0_84, %c0_85, %c1_86, %c0_87] : memref<4x2x9x9xf32, #tpu.memory_space<vmem>>, vector<1x2x8x8xf32>
    %243 = vector.shape_cast %242 : vector<1x2x8x8xf32> to vector<2x8x8xf32>
    %c1_88 = arith.constant 1 : index
    %c0_89 = arith.constant 0 : index
    %c1_90 = arith.constant 1 : index
    %c0_91 = arith.constant 0 : index
    %244 = vector.load %arg6[%c1_88, %c0_89, %c1_90, %c0_91] : memref<4x2x9x9xf32, #tpu.memory_space<vmem>>, vector<1x2x8x8xf32>
    %245 = vector.shape_cast %244 : vector<1x2x8x8xf32> to vector<2x8x8xf32>
    %c2_92 = arith.constant 2 : index
    %c0_93 = arith.constant 0 : index
    %c1_94 = arith.constant 1 : index
    %c0_95 = arith.constant 0 : index
    %246 = vector.load %arg6[%c2_92, %c0_93, %c1_94, %c0_95] : memref<4x2x9x9xf32, #tpu.memory_space<vmem>>, vector<1x2x8x8xf32>
    %247 = vector.shape_cast %246 : vector<1x2x8x8xf32> to vector<2x8x8xf32>
    %c3_96 = arith.constant 3 : index
    %c0_97 = arith.constant 0 : index
    %c1_98 = arith.constant 1 : index
    %c0_99 = arith.constant 0 : index
    %248 = vector.load %arg6[%c3_96, %c0_97, %c1_98, %c0_99] : memref<4x2x9x9xf32, #tpu.memory_space<vmem>>, vector<1x2x8x8xf32>
    %249 = vector.shape_cast %248 : vector<1x2x8x8xf32> to vector<2x8x8xf32>
    %c0_100 = arith.constant 0 : index
    %c0_101 = arith.constant 0 : index
    %c1_102 = arith.constant 1 : index
    %c1_103 = arith.constant 1 : index
    %250 = vector.load %arg6[%c0_100, %c0_101, %c1_102, %c1_103] : memref<4x2x9x9xf32, #tpu.memory_space<vmem>>, vector<1x2x8x8xf32>
    %251 = vector.shape_cast %250 : vector<1x2x8x8xf32> to vector<2x8x8xf32>
    %c1_104 = arith.constant 1 : index
    %c0_105 = arith.constant 0 : index
    %c1_106 = arith.constant 1 : index
    %c1_107 = arith.constant 1 : index
    %252 = vector.load %arg6[%c1_104, %c0_105, %c1_106, %c1_107] : memref<4x2x9x9xf32, #tpu.memory_space<vmem>>, vector<1x2x8x8xf32>
    %253 = vector.shape_cast %252 : vector<1x2x8x8xf32> to vector<2x8x8xf32>
    %c2_108 = arith.constant 2 : index
    %c0_109 = arith.constant 0 : index
    %c1_110 = arith.constant 1 : index
    %c1_111 = arith.constant 1 : index
    %254 = vector.load %arg6[%c2_108, %c0_109, %c1_110, %c1_111] : memref<4x2x9x9xf32, #tpu.memory_space<vmem>>, vector<1x2x8x8xf32>
    %255 = vector.shape_cast %254 : vector<1x2x8x8xf32> to vector<2x8x8xf32>
    %c3_112 = arith.constant 3 : index
    %c0_113 = arith.constant 0 : index
    %c1_114 = arith.constant 1 : index
    %c1_115 = arith.constant 1 : index
    %256 = vector.load %arg6[%c3_112, %c0_113, %c1_114, %c1_115] : memref<4x2x9x9xf32, #tpu.memory_space<vmem>>, vector<1x2x8x8xf32>
    %257 = vector.shape_cast %256 : vector<1x2x8x8xf32> to vector<2x8x8xf32>
    %cst_116 = arith.constant 0.000000e+00 : f32
    %258 = vector.broadcast %cst_116 : f32 to vector<2x8x8xf32>
    %c0_117 = arith.constant 0 : index
    %259 = memref.load %arg3[%c0_117] : memref<36xf32, #tpu.memory_space<smem>>
    %260 = vector.broadcast %259 : f32 to vector<2x8x8xf32>
    %261 = arith.mulf %251, %260 : vector<2x8x8xf32>
    %262 = arith.addf %258, %261 : vector<2x8x8xf32>
    %c9_118 = arith.constant 9 : index
    %263 = memref.load %arg3[%c9_118] : memref<36xf32, #tpu.memory_space<smem>>
    %264 = vector.broadcast %263 : f32 to vector<2x8x8xf32>
    %265 = arith.mulf %253, %264 : vector<2x8x8xf32>
    %266 = arith.addf %262, %265 : vector<2x8x8xf32>
    %c18_119 = arith.constant 18 : index
    %267 = memref.load %arg3[%c18_119] : memref<36xf32, #tpu.memory_space<smem>>
    %268 = vector.broadcast %267 : f32 to vector<2x8x8xf32>
    %269 = arith.mulf %255, %268 : vector<2x8x8xf32>
    %270 = arith.addf %266, %269 : vector<2x8x8xf32>
    %c27_120 = arith.constant 27 : index
    %271 = memref.load %arg3[%c27_120] : memref<36xf32, #tpu.memory_space<smem>>
    %272 = vector.broadcast %271 : f32 to vector<2x8x8xf32>
    %273 = arith.mulf %257, %272 : vector<2x8x8xf32>
    %274 = arith.addf %270, %273 : vector<2x8x8xf32>
    %c2_121 = arith.constant 2 : index
    %275 = memref.load %arg3[%c2_121] : memref<36xf32, #tpu.memory_space<smem>>
    %276 = vector.broadcast %275 : f32 to vector<2x8x8xf32>
    %277 = arith.mulf %243, %276 : vector<2x8x8xf32>
    %278 = arith.addf %274, %277 : vector<2x8x8xf32>
    %c11_122 = arith.constant 11 : index
    %279 = memref.load %arg3[%c11_122] : memref<36xf32, #tpu.memory_space<smem>>
    %280 = vector.broadcast %279 : f32 to vector<2x8x8xf32>
    %281 = arith.mulf %245, %280 : vector<2x8x8xf32>
    %282 = arith.addf %278, %281 : vector<2x8x8xf32>
    %c20_123 = arith.constant 20 : index
    %283 = memref.load %arg3[%c20_123] : memref<36xf32, #tpu.memory_space<smem>>
    %284 = vector.broadcast %283 : f32 to vector<2x8x8xf32>
    %285 = arith.mulf %247, %284 : vector<2x8x8xf32>
    %286 = arith.addf %282, %285 : vector<2x8x8xf32>
    %c29_124 = arith.constant 29 : index
    %287 = memref.load %arg3[%c29_124] : memref<36xf32, #tpu.memory_space<smem>>
    %288 = vector.broadcast %287 : f32 to vector<2x8x8xf32>
    %289 = arith.mulf %249, %288 : vector<2x8x8xf32>
    %290 = arith.addf %286, %289 : vector<2x8x8xf32>
    %c6_125 = arith.constant 6 : index
    %291 = memref.load %arg3[%c6_125] : memref<36xf32, #tpu.memory_space<smem>>
    %292 = vector.broadcast %291 : f32 to vector<2x8x8xf32>
    %293 = arith.mulf %235, %292 : vector<2x8x8xf32>
    %294 = arith.addf %290, %293 : vector<2x8x8xf32>
    %c15_126 = arith.constant 15 : index
    %295 = memref.load %arg3[%c15_126] : memref<36xf32, #tpu.memory_space<smem>>
    %296 = vector.broadcast %295 : f32 to vector<2x8x8xf32>
    %297 = arith.mulf %237, %296 : vector<2x8x8xf32>
    %298 = arith.addf %294, %297 : vector<2x8x8xf32>
    %c24_127 = arith.constant 24 : index
    %299 = memref.load %arg3[%c24_127] : memref<36xf32, #tpu.memory_space<smem>>
    %300 = vector.broadcast %299 : f32 to vector<2x8x8xf32>
    %301 = arith.mulf %239, %300 : vector<2x8x8xf32>
    %302 = arith.addf %298, %301 : vector<2x8x8xf32>
    %c33_128 = arith.constant 33 : index
    %303 = memref.load %arg3[%c33_128] : memref<36xf32, #tpu.memory_space<smem>>
    %304 = vector.broadcast %303 : f32 to vector<2x8x8xf32>
    %305 = arith.mulf %241, %304 : vector<2x8x8xf32>
    %306 = arith.addf %302, %305 : vector<2x8x8xf32>
    %c8_129 = arith.constant 8 : index
    %307 = memref.load %arg3[%c8_129] : memref<36xf32, #tpu.memory_space<smem>>
    %308 = vector.broadcast %307 : f32 to vector<2x8x8xf32>
    %309 = arith.mulf %227, %308 : vector<2x8x8xf32>
    %310 = arith.addf %306, %309 : vector<2x8x8xf32>
    %c17_130 = arith.constant 17 : index
    %311 = memref.load %arg3[%c17_130] : memref<36xf32, #tpu.memory_space<smem>>
    %312 = vector.broadcast %311 : f32 to vector<2x8x8xf32>
    %313 = arith.mulf %229, %312 : vector<2x8x8xf32>
    %314 = arith.addf %310, %313 : vector<2x8x8xf32>
    %c26_131 = arith.constant 26 : index
    %315 = memref.load %arg3[%c26_131] : memref<36xf32, #tpu.memory_space<smem>>
    %316 = vector.broadcast %315 : f32 to vector<2x8x8xf32>
    %317 = arith.mulf %231, %316 : vector<2x8x8xf32>
    %318 = arith.addf %314, %317 : vector<2x8x8xf32>
    %c35_132 = arith.constant 35 : index
    %319 = memref.load %arg3[%c35_132] : memref<36xf32, #tpu.memory_space<smem>>
    %320 = vector.broadcast %319 : f32 to vector<2x8x8xf32>
    %321 = arith.mulf %233, %320 : vector<2x8x8xf32>
    %322 = arith.addf %318, %321 : vector<2x8x8xf32>
    %c0_133 = arith.constant 0 : index
    %323 = memref.load %arg4[%c0_133] : memref<1xf32, #tpu.memory_space<smem>>
    %324 = vector.broadcast %323 : f32 to vector<2x8x8xf32>
    %325 = arith.addf %322, %324 : vector<2x8x8xf32>
    %cst_134 = arith.constant 0.000000e+00 : f32
    %326 = vector.broadcast %cst_134 : f32 to vector<2x8x8xf32>
    %327 = arith.maximumf %325, %326 : vector<2x8x8xf32>
    %c0_135 = arith.constant 0 : index
    %c0_136 = arith.constant 0 : index
    %c0_137 = arith.constant 0 : index
    %c0_138 = arith.constant 0 : index
    %c0_139 = arith.constant 0 : index
    %328 = vector.load %arg5[%c0_135, %c0_136, %c0_137, %c0_138, %c0_139] : memref<2x2x2x8x8xf32, #tpu.memory_space<vmem>>, vector<1x1x2x8x8xf32>
    %329 = vector.shape_cast %328 : vector<1x1x2x8x8xf32> to vector<2x8x8xf32>
    %330 = vector.shape_cast %327 : vector<2x8x8xf32> to vector<1x1x2x8x8xf32>
    tpu.vector_store %arg5[%c0_135, %c0_136, %c0_137, %c0_138, %c0_139], %330 {strides = array<i32>} : memref<2x2x2x8x8xf32, #tpu.memory_space<vmem>>, vector<1x1x2x8x8xf32>,
    %cst_140 = arith.constant 0.000000e+00 : f32
    %331 = vector.broadcast %cst_140 : f32 to vector<2x8x8xf32>
    %c1_141 = arith.constant 1 : index
    %332 = memref.load %arg3[%c1_141] : memref<36xf32, #tpu.memory_space<smem>>
    %333 = vector.broadcast %332 : f32 to vector<2x8x8xf32>
    %334 = arith.mulf %251, %333 : vector<2x8x8xf32>
    %335 = arith.addf %331, %334 : vector<2x8x8xf32>
    %c10_142 = arith.constant 10 : index
    %336 = memref.load %arg3[%c10_142] : memref<36xf32, #tpu.memory_space<smem>>
    %337 = vector.broadcast %336 : f32 to vector<2x8x8xf32>
    %338 = arith.mulf %253, %337 : vector<2x8x8xf32>
    %339 = arith.addf %335, %338 : vector<2x8x8xf32>
    %c19_143 = arith.constant 19 : index
    %340 = memref.load %arg3[%c19_143] : memref<36xf32, #tpu.memory_space<smem>>
    %341 = vector.broadcast %340 : f32 to vector<2x8x8xf32>
    %342 = arith.mulf %255, %341 : vector<2x8x8xf32>
    %343 = arith.addf %339, %342 : vector<2x8x8xf32>
    %c28_144 = arith.constant 28 : index
    %344 = memref.load %arg3[%c28_144] : memref<36xf32, #tpu.memory_space<smem>>
    %345 = vector.broadcast %344 : f32 to vector<2x8x8xf32>
    %346 = arith.mulf %257, %345 : vector<2x8x8xf32>
    %347 = arith.addf %343, %346 : vector<2x8x8xf32>
    %c7_145 = arith.constant 7 : index
    %348 = memref.load %arg3[%c7_145] : memref<36xf32, #tpu.memory_space<smem>>
    %349 = vector.broadcast %348 : f32 to vector<2x8x8xf32>
    %350 = arith.mulf %235, %349 : vector<2x8x8xf32>
    %351 = arith.addf %347, %350 : vector<2x8x8xf32>
    %c16_146 = arith.constant 16 : index
    %352 = memref.load %arg3[%c16_146] : memref<36xf32, #tpu.memory_space<smem>>
    %353 = vector.broadcast %352 : f32 to vector<2x8x8xf32>
    %354 = arith.mulf %237, %353 : vector<2x8x8xf32>
    %355 = arith.addf %351, %354 : vector<2x8x8xf32>
    %c25_147 = arith.constant 25 : index
    %356 = memref.load %arg3[%c25_147] : memref<36xf32, #tpu.memory_space<smem>>
    %357 = vector.broadcast %356 : f32 to vector<2x8x8xf32>
    %358 = arith.mulf %239, %357 : vector<2x8x8xf32>
    %359 = arith.addf %355, %358 : vector<2x8x8xf32>
    %c34_148 = arith.constant 34 : index
    %360 = memref.load %arg3[%c34_148] : memref<36xf32, #tpu.memory_space<smem>>
    %361 = vector.broadcast %360 : f32 to vector<2x8x8xf32>
    %362 = arith.mulf %241, %361 : vector<2x8x8xf32>
    %363 = arith.addf %359, %362 : vector<2x8x8xf32>
    %c0_149 = arith.constant 0 : index
    %364 = memref.load %arg4[%c0_149] : memref<1xf32, #tpu.memory_space<smem>>
    %365 = vector.broadcast %364 : f32 to vector<2x8x8xf32>
    %366 = arith.addf %363, %365 : vector<2x8x8xf32>
    %cst_150 = arith.constant 0.000000e+00 : f32
    %367 = vector.broadcast %cst_150 : f32 to vector<2x8x8xf32>
    %368 = arith.maximumf %366, %367 : vector<2x8x8xf32>
    %c0_151 = arith.constant 0 : index
    %c1_152 = arith.constant 1 : index
    %c0_153 = arith.constant 0 : index
    %c0_154 = arith.constant 0 : index
    %c0_155 = arith.constant 0 : index
    %369 = vector.load %arg5[%c0_151, %c1_152, %c0_153, %c0_154, %c0_155] : memref<2x2x2x8x8xf32, #tpu.memory_space<vmem>>, vector<1x1x2x8x8xf32>
    %370 = vector.shape_cast %369 : vector<1x1x2x8x8xf32> to vector<2x8x8xf32>
    %371 = vector.shape_cast %368 : vector<2x8x8xf32> to vector<1x1x2x8x8xf32>
    tpu.vector_store %arg5[%c0_151, %c1_152, %c0_153, %c0_154, %c0_155], %371 {strides = array<i32>} : memref<2x2x2x8x8xf32, #tpu.memory_space<vmem>>, vector<1x1x2x8x8xf32>,
    %cst_156 = arith.constant 0.000000e+00 : f32
    %372 = vector.broadcast %cst_156 : f32 to vector<2x8x8xf32>
    %c3_157 = arith.constant 3 : index
    %373 = memref.load %arg3[%c3_157] : memref<36xf32, #tpu.memory_space<smem>>
    %374 = vector.broadcast %373 : f32 to vector<2x8x8xf32>
    %375 = arith.mulf %251, %374 : vector<2x8x8xf32>
    %376 = arith.addf %372, %375 : vector<2x8x8xf32>
    %c12_158 = arith.constant 12 : index
    %377 = memref.load %arg3[%c12_158] : memref<36xf32, #tpu.memory_space<smem>>
    %378 = vector.broadcast %377 : f32 to vector<2x8x8xf32>
    %379 = arith.mulf %253, %378 : vector<2x8x8xf32>
    %380 = arith.addf %376, %379 : vector<2x8x8xf32>
    %c21_159 = arith.constant 21 : index
    %381 = memref.load %arg3[%c21_159] : memref<36xf32, #tpu.memory_space<smem>>
    %382 = vector.broadcast %381 : f32 to vector<2x8x8xf32>
    %383 = arith.mulf %255, %382 : vector<2x8x8xf32>
    %384 = arith.addf %380, %383 : vector<2x8x8xf32>
    %c30_160 = arith.constant 30 : index
    %385 = memref.load %arg3[%c30_160] : memref<36xf32, #tpu.memory_space<smem>>
    %386 = vector.broadcast %385 : f32 to vector<2x8x8xf32>
    %387 = arith.mulf %257, %386 : vector<2x8x8xf32>
    %388 = arith.addf %384, %387 : vector<2x8x8xf32>
    %c5_161 = arith.constant 5 : index
    %389 = memref.load %arg3[%c5_161] : memref<36xf32, #tpu.memory_space<smem>>
    %390 = vector.broadcast %389 : f32 to vector<2x8x8xf32>
    %391 = arith.mulf %243, %390 : vector<2x8x8xf32>
    %392 = arith.addf %388, %391 : vector<2x8x8xf32>
    %c14_162 = arith.constant 14 : index
    %393 = memref.load %arg3[%c14_162] : memref<36xf32, #tpu.memory_space<smem>>
    %394 = vector.broadcast %393 : f32 to vector<2x8x8xf32>
    %395 = arith.mulf %245, %394 : vector<2x8x8xf32>
    %396 = arith.addf %392, %395 : vector<2x8x8xf32>
    %c23_163 = arith.constant 23 : index
    %397 = memref.load %arg3[%c23_163] : memref<36xf32, #tpu.memory_space<smem>>
    %398 = vector.broadcast %397 : f32 to vector<2x8x8xf32>
    %399 = arith.mulf %247, %398 : vector<2x8x8xf32>
    %400 = arith.addf %396, %399 : vector<2x8x8xf32>
    %c32_164 = arith.constant 32 : index
    %401 = memref.load %arg3[%c32_164] : memref<36xf32, #tpu.memory_space<smem>>
    %402 = vector.broadcast %401 : f32 to vector<2x8x8xf32>
    %403 = arith.mulf %249, %402 : vector<2x8x8xf32>
    %404 = arith.addf %400, %403 : vector<2x8x8xf32>
    %c0_165 = arith.constant 0 : index
    %405 = memref.load %arg4[%c0_165] : memref<1xf32, #tpu.memory_space<smem>>
    %406 = vector.broadcast %405 : f32 to vector<2x8x8xf32>
    %407 = arith.addf %404, %406 : vector<2x8x8xf32>
    %cst_166 = arith.constant 0.000000e+00 : f32
    %408 = vector.broadcast %cst_166 : f32 to vector<2x8x8xf32>
    %409 = arith.maximumf %407, %408 : vector<2x8x8xf32>
    %c1_167 = arith.constant 1 : index
    %c0_168 = arith.constant 0 : index
    %c0_169 = arith.constant 0 : index
    %c0_170 = arith.constant 0 : index
    %c0_171 = arith.constant 0 : index
    %410 = vector.load %arg5[%c1_167, %c0_168, %c0_169, %c0_170, %c0_171] : memref<2x2x2x8x8xf32, #tpu.memory_space<vmem>>, vector<1x1x2x8x8xf32>
    %411 = vector.shape_cast %410 : vector<1x1x2x8x8xf32> to vector<2x8x8xf32>
    %412 = vector.shape_cast %409 : vector<2x8x8xf32> to vector<1x1x2x8x8xf32>
    tpu.vector_store %arg5[%c1_167, %c0_168, %c0_169, %c0_170, %c0_171], %412 {strides = array<i32>} : memref<2x2x2x8x8xf32, #tpu.memory_space<vmem>>, vector<1x1x2x8x8xf32>,
    %cst_172 = arith.constant 0.000000e+00 : f32
    %413 = vector.broadcast %cst_172 : f32 to vector<2x8x8xf32>
    %c4_173 = arith.constant 4 : index
    %414 = memref.load %arg3[%c4_173] : memref<36xf32, #tpu.memory_space<smem>>
    %415 = vector.broadcast %414 : f32 to vector<2x8x8xf32>
    %416 = arith.mulf %251, %415 : vector<2x8x8xf32>
    %417 = arith.addf %413, %416 : vector<2x8x8xf32>
    %c13_174 = arith.constant 13 : index
    %418 = memref.load %arg3[%c13_174] : memref<36xf32, #tpu.memory_space<smem>>
    %419 = vector.broadcast %418 : f32 to vector<2x8x8xf32>
    %420 = arith.mulf %253, %419 : vector<2x8x8xf32>
    %421 = arith.addf %417, %420 : vector<2x8x8xf32>
    %c22_175 = arith.constant 22 : index
    %422 = memref.load %arg3[%c22_175] : memref<36xf32, #tpu.memory_space<smem>>
    %423 = vector.broadcast %422 : f32 to vector<2x8x8xf32>
    %424 = arith.mulf %255, %423 : vector<2x8x8xf32>
    %425 = arith.addf %421, %424 : vector<2x8x8xf32>
    %c31_176 = arith.constant 31 : index
    %426 = memref.load %arg3[%c31_176] : memref<36xf32, #tpu.memory_space<smem>>
    %427 = vector.broadcast %426 : f32 to vector<2x8x8xf32>
    %428 = arith.mulf %257, %427 : vector<2x8x8xf32>
    %429 = arith.addf %425, %428 : vector<2x8x8xf32>
    %c0_177 = arith.constant 0 : index
    %430 = memref.load %arg4[%c0_177] : memref<1xf32, #tpu.memory_space<smem>>
    %431 = vector.broadcast %430 : f32 to vector<2x8x8xf32>
    %432 = arith.addf %429, %431 : vector<2x8x8xf32>
    %cst_178 = arith.constant 0.000000e+00 : f32
    %433 = vector.broadcast %cst_178 : f32 to vector<2x8x8xf32>
    %434 = arith.maximumf %432, %433 : vector<2x8x8xf32>
    %c1_179 = arith.constant 1 : index
    %c1_180 = arith.constant 1 : index
    %c0_181 = arith.constant 0 : index
    %c0_182 = arith.constant 0 : index
    %c0_183 = arith.constant 0 : index
    %435 = vector.load %arg5[%c1_179, %c1_180, %c0_181, %c0_182, %c0_183] : memref<2x2x2x8x8xf32, #tpu.memory_space<vmem>>, vector<1x1x2x8x8xf32>
    %436 = vector.shape_cast %435 : vector<1x1x2x8x8xf32> to vector<2x8x8xf32>
    %437 = vector.shape_cast %434 : vector<2x8x8xf32> to vector<1x1x2x8x8xf32>
    tpu.vector_store %arg5[%c1_179, %c1_180, %c0_181, %c0_182, %c0_183], %437 {strides = array<i32>} : memref<2x2x2x8x8xf32, #tpu.memory_space<vmem>>, vector<1x1x2x8x8xf32>,
    return
  }
}

</mosaic_0001>

<bundles_post_ra>
// kernel: _forward.1
= control target key start
LH: loop header
LB: loop body
LE: loop exit
PB: predicated region body
PF: predicated region fallthrough
CT: control target
= control target key end

     0   :  { %11 = vsyncpa [#allocation5], 0  ;;  %s1853_s0 = inlined_call_operand.vmem [shape: f32[2,2,2,9,9], index: 0, kind: input, shape index: {}]   ;;  %s1854_s1 = inlined_call_operand.vmem [shape: f32[36], index: 1, kind: input, shape index: {}]   ;;  %s1855_s2 = inlined_call_operand.vmem [shape: f32[4], index: 2, kind: input, shape index: {}]   ;;  %s1856_s3 = inlined_call_operand.vmem [shape: f32[36], index: 3, kind: input, shape index: {}]   ;;  %s1857_s4 = inlined_call_operand.<no memory space> [shape: f32[1], index: 4, kind: input, shape index: {}]   ;;  %s1858_s5 = inlined_call_operand.vmem [shape: f32[2,2,2,8,8], index: 5, kind: output, shape index: {}]  }
   0x1   :  { %12 = vsyncpa [#allocation7], 0  ;;  %s31_s20 = sshll.u32 %s1855_s2, 4  ;;  %s21_s23 = sshll.u32 %s1854_s1, 4  ;;  %s32_s20 = int_to_ptr.vmem [resolvable:$true] %s31_s20  ;;  %s22_s23 = int_to_ptr.vmem [resolvable:$true] %s21_s23 }
   0x2   :  { %s1118_s24 = scalar_lea.vmem %s32_s20, 16  ;;  %p1123_p1 = scmp.lt.s32.totalorder %s32_s20, %s32_s20 }
   0x3   :  { %p1119_p0 = scmp.ne.s32.totalorder %s32_s20, %s1118_s24  ;;  %p1124_p2 = scmp.lt.s32.totalorder %s1118_s24, %s1118_s24 }
   0x5   :  { %p1125_p3 = por %p1124_p2, %p1123_p1 }
   0x7   :  { %p1126_p4 = pnand %p1125_p3, %p1119_p0 }
   0x9   :  { %1129 = shalt.err (!%p1126_p4)
}
   0xa   :  { %s1158_s25 = smov [#allocation6]   ;;  %s1130_s26 = scalar_lea.vmem %s22_s23, 16 }
   0xb   :  { %34 = dma.vmem_to_smem %s32_s20, 16, %s1158_s25, [#allocation7]  }
   0xc   :  { %p1131_p5 = scmp.ne.s32.totalorder %s22_s23, %s1130_s26  ;;  %p1135_p6 = scmp.lt.s32.totalorder %s22_s23, %s22_s23 }
   0xd   :  { %p1136_p7 = scmp.lt.s32.totalorder %s1130_s26, %s1130_s26 }
   0xf   :  { %p1137_p8 = por %p1136_p7, %p1135_p6 }
  0x11   :  { %p1138_p9 = pnand %p1137_p8, %p1131_p5 }
  0x13   :  { %1141 = shalt.err (!%p1138_p9)
}
  0x14   :  { %s1159_s2 = smov [#allocation4]   ;;  %s41_s28 = sshll.u32 %s1856_s3, 4  ;;  %s42_s28 = int_to_ptr.vmem [resolvable:$true] %s41_s28 }
  0x15   :  { %24 = dma.vmem_to_smem %s22_s23, 16, %s1159_s2, [#allocation5]  }
  0x16   :  { %s1142_s29 = scalar_lea.vmem %s42_s28, 16  ;;  %p1147_p11 = scmp.lt.s32.totalorder %s42_s28, %s42_s28 }
  0x17   :  { %p1143_p10 = scmp.ne.s32.totalorder %s42_s28, %s1142_s29  ;;  %p1148_p12 = scmp.lt.s32.totalorder %s1142_s29, %s1142_s29 }
  0x19   :  { %p1149_p13 = por %p1148_p12, %p1147_p11 }
  0x1b   :  { %p1150_p0 = pnand %p1149_p13, %p1143_p10 }
  0x1d   :  { %1153 = shalt.err (!%p1150_p0)
}
  0x1e   :  { %s1160_s30 = smov [#allocation8]  }
  0x1f   :  { %44 = dma.vmem_to_smem %s42_s28, 16, %s1160_s30, [#allocation7]  }
  0x20   :  { %1154 = dma.done.wait [#allocation5], 16  }
  0x21   :  { %1155 = vsyncadd [#allocation5], 4294967280 }
  0x22   :  { %1156 = dma.done.wait [#allocation7], 32  }
  0x23   :  { %1157 = vsyncadd [#allocation7], 4294967264 }
  0x24   :  { %56 = sfence }
  0x25   :  { %s1043_s6 = sld [smem:[#allocation4 + $0xb]]  ;;  %s1034_s7 = sld [smem:[#allocation4 + $0x2]]  ;;  %v1206_v0 = vld [vmem:[%s1853_s0] sm:$0xff]  ;;  %v1211_v1 = vld [vmem:[%s1853_s0 + $0x10] sm:$0xff]  ;;  %v1242_v17 = vld [vmem:[%s1853_s0 + $0x18] sm:$0x1] }
  0x26   :  { %s1053_s8 = sld [smem:[#allocation4 + $0x14]]  ;;  %s1037_s12 = sld [smem:[#allocation4 + $0x5]]  ;;  %v1226_v11 = vld [vmem:[%s1853_s0 + $0x50] sm:$0xff]  ;;  %v1231_v13 = vld [vmem:[%s1853_s0 + $0x40] sm:$0xff]  ;;  %v1253_v24 = vld [vmem:[%s1853_s0 + $0x8] sm:$0x1] }
  0x27   :  { %s1161_s13 = smov 127   ;;  %s1063_s14 = sld [smem:[#allocation4 + $0x1d]]  ;;  %vm152_vm0 = vcmask 1046528   ;;  %vm57_vm1 = vcmask 72704   ;;  %vm59_vm2 = vcmask 65536   ;;  %vm221_vm3 = vcmask 72712  }
  0x28   :  { %s1040_s15 = sld [smem:[#allocation4 + $0x8]]  ;;  %s1046_s18 = sld [smem:[#allocation4 + $0xe]]  ;;  %vm813_vm4 = vcmask 64512  }
  0x29   :  { %s1049_s21 = sld [smem:[#allocation4 + $0x11]]  ;;  %s1237_s22 = sld [smem:[#allocation4 + $0x17]] }
  0x2a   :  { %s1059_s25 = sld [smem:[#allocation4 + $0x1a]]  ;;  %s1255_s1 = sld [smem:[#allocation4 + $0x20]] }
  0x2b   :  { %v237_v2 = vstv %s1043_s6  ;;  %v103_v4 = vstv %s1034_s7  ;;  %s1038_s27 = sld [smem:[#allocation4 + $0x6]]  ;;  %s1267_s28 = sld [smem:[#allocation4 + $0x23]] }
  0x2c   :  { %v238_v3 = vmul.f32 %v237_v2, %v1206_v0  ;;  %v104_v5 = vmul.f32 %v103_v4, %v1206_v0  ;;  %v239_v6 = vmul.f32 %v237_v2, %v1211_v1  ;;  %v105_v7 = vmul.f32 %v103_v4, %v1211_v1  ;;  %s1274_s29 = sld [smem:[#allocation4 + $0xf]]  ;;  %s1279_s30 = sld [smem:[#allocation4 + $0x18]] }
  0x2d   :  { %v370_v8 = vstv %s1053_s8  ;;  %v129_v12 = vstv %s1037_s12  ;;  %v503_v16 = vstv %s1063_s14  ;;  %s1067_s6 = sld [smem:[#allocation4 + $0x21]]  ;;  %s1042_s8 = sld [smem:[#allocation4 + $0xa]] }
  0x2e   :  { %242 = vrot.lane.b32.xlu1 %v238_v3, %s1161_s13  ;;  %108 = vrot.lane.b32.xlu0 %v104_v5, %s1161_s13  ;;  %v372_v9 = vmul.f32 %v370_v8, %v1211_v1  ;;  %v371_v10 = vmul.f32 %v370_v8, %v1206_v0  ;;  %v131_v14 = vmul.f32 %v1226_v11, %v129_v12  ;;  %v184_v18 = vstv %s1040_s15  ;;  %s1041_s7 = sld [smem:[#allocation4 + $0x9]]  ;;  %s90_s9 = sld [smem:[#allocation4]] }
  0x2f   :  { %v130_v15 = vmul.f32 %v1231_v13, %v129_v12  ;;  %v505_v19 = vmul.f32 %v503_v16, %v1211_v1  ;;  %v504_v20 = vmul.f32 %v503_v16, %v1206_v0  ;;  %v263_v21 = vstv %s1046_s18  ;;  %s1033_s3 = sld [smem:[#allocation4 + $0x1]]  ;;  %s1352_s10 = sld [smem:[#allocation4 + $0xc]] }
  0x30   :  { %v187_v22 = vmul.f32 %v184_v18, %v1211_v1  ;;  %v188_v23 = vmul.f32 %v184_v18, %v1242_v17  ;;  %v317_v25 = vstv %s1049_s21  ;;  %v265_v26 = vmul.f32 %v1226_v11, %v263_v21  ;;  %s1354_s11 = sld [smem:[#allocation4 + $0x3]]  ;;  %s1356_s12 = sld [smem:[#allocation4 + $0x12]] }
  0x31   :  { %v264_v27 = vmul.f32 %v1231_v13, %v263_v21  ;;  %v396_v28 = vstv %s1237_s22  ;;  %v185_v29 = vmul.f32 %v184_v18, %v1206_v0  ;;  %v186_v30 = vmul.f32 %v184_v18, %v1253_v24  ;;  %s1358_s14 = sld [smem:[#allocation4 + $0x13]]  ;;  %s1365_s17 = sld [smem:[#allocation4 + $0x15]] }
  0x32   :  { %244 = vrot.lane.b32.xlu1 %v239_v6, %s1161_s13  ;;  %110 = vrot.lane.b32.xlu0 %v105_v7, %s1161_s13  ;;  %v196_v31 = vrot.slane %v187_v22, 1  ;;  %v197_v32 = vrot.slane %v188_v23, 1  ;;  %v320_v33 = vmul.f32 %v317_v25, %v1211_v1  ;;  %v321_v34 = vmul.f32 %v317_v25, %v1242_v17  ;;  %s1374_s20 = sld [smem:[#allocation4 + $0x4]]  ;;  %s1378_s21 = sld [smem:[#allocation4 + $0x1b]] }
  0x33   :  { %v318_v35 = vmul.f32 %v317_v25, %v1206_v0  ;;  %v398_v36 = vmul.f32 %v1226_v11, %v396_v28  ;;  %v319_v37 = vmul.f32 %v317_v25, %v1253_v24  ;;  %v450_v38 = vstv %s1059_s25  ;;  %s1380_s22 = sld [smem:[#allocation4 + $0x7]]  ;;  %s1390_s23 = sld [smem:[#allocation4 + $0x1c]] }
  0x34   :  { %v397_v39 = vmul.f32 %v1231_v13, %v396_v28  ;;  %v193_v40 = vrot.slane %v185_v29, 1  ;;  %v194_v41 = vrot.slane %v186_v30, 1  ;;  %v198_v42 = vsel %vm152_vm0, %v196_v31, %v197_v32  ;;  %s1392_s24 = sld [smem:[#allocation4 + $0x1e]]  ;;  %s1406_s2 = sld [smem:[#allocation4 + $0x10]] }
  0x35   :  { %v529_v43 = vstv %s1255_s1  ;;  %v329_v44 = vrot.slane %v320_v33, 1  ;;  %v330_v45 = vrot.slane %v321_v34, 1  ;;  %v326_v46 = vrot.slane %v318_v35, 1  ;;  %s1070_s15 = sld [smem:[#allocation6 + $0x3]]  ;;  %s1074_s16 = sld [smem:[#allocation8 + $0x2]] }
  0x36   :  { %377 = vrot.lane.b32.xlu1 %v372_v9, %s1161_s13  ;;  %375 = vrot.lane.b32.xlu0 %v371_v10, %s1161_s13  ;;  %v453_v47 = vmul.f32 %v450_v38, %v1211_v1  ;;  %v143_v48 = vstv %s1038_s27  ;;  %v327_v49 = vrot.slane %v319_v37, 1  ;;  %v195_v53 = vsel %vm152_vm0, %v193_v40, %v194_v41  ;;  %s1548_s18 = sld [smem:[#allocation8 + $0x1]]  ;;  %s1550_s19 = sld [smem:[#allocation8 + $0xb]] }
  0x37   :  { %v146_v50 = vmul.f32 %v143_v48, %v1211_v1  ;;  %v147_v51 = vmul.f32 %v143_v48, %v1242_v17  ;;  %v144_v52 = vmul.f32 %v143_v48, %v1206_v0  ;;  %v454_v54 = vmul.f32 %v450_v38, %v1242_v17  ;;  %s1568_s25 = sld [smem:[#allocation8 + $0x11]]  ;;  %s1576_s1 = sld [smem:[#allocation8 + $0xe]] }
  0x38   :  { %v451_v55 = vmul.f32 %v450_v38, %v1206_v0  ;;  %v145_v56 = vmul.f32 %v143_v48, %v1253_v24  ;;  %v452_v57 = vmul.f32 %v450_v38, %v1253_v24  ;;  %v531_v61 = vmul.f32 %v1226_v11, %v529_v43  ;;  %s1570_s26 = sld [smem:[#allocation8 + $0x9]]  ;;  %s1579_s27 = sld [smem:[#allocation8 + $0x13]] }
  0x39   :  { %v156_v58 = vrot.slane %v146_v50, 1  ;;  %v157_v59 = vrot.slane %v147_v51, 1  ;;  %v153_v60 = vrot.slane %v144_v52, 1  ;;  %v530_v62 = vmul.f32 %v1231_v13, %v529_v43 }
  0x3a   :  { %136 = vrot.lane.b32.xlu1 %v131_v14, %s1161_s13  ;;  %134 = vrot.lane.b32.xlu0 %v130_v15, %s1161_s13  ;;  %v583_v63 = vstv %s1267_s28  ;;  %v154_v2 = vrot.slane %v145_v56, 1  ;;  %v331_v3 = vsel %vm152_vm0, %v329_v44, %v330_v45  ;;  %v328_v4 = vsel %vm152_vm0, %v326_v46, %v327_v49  ;;  %s1416_s28 = sld [smem:[#allocation4 + $0xd]] }
  0x3b   :  { %v462_v5 = vrot.slane %v453_v47, 1  ;;  %v1298_v6 = vsel %vm152_vm0, %v156_v58, %v157_v59  ;;  %v463_v7 = vrot.slane %v454_v54, 1  ;;  %v459_v8 = vrot.slane %v451_v55, 1 }
  0x3c   :  { %v1302_v9 = vsel %vm152_vm0, %v153_v60, %v154_v2  ;;  %v277_v10 = vstv %s1274_s29  ;;  %v460_v12 = vrot.slane %v452_v57, 1  ;;  %v586_v14 = vmul.f32 %v583_v63, %v1211_v1  ;;  %s1418_s29 = sld [smem:[#allocation4 + $0x16]] }
  0x3d   :  { %v280_v15 = vmul.f32 %v277_v10, %v1211_v1  ;;  %v281_v16 = vmul.f32 %v277_v10, %v1242_v17  ;;  %v587_v18 = vmul.f32 %v583_v63, %v1242_v17  ;;  %v410_v21 = vstv %s1279_s30  ;;  %s1586_s30 = sld [smem:[#allocation8 + $0xc]] }
  0x3e   :  { %510 = vrot.lane.b32.xlu1 %v505_v19, %s1161_s13  ;;  %508 = vrot.lane.b32.xlu0 %v504_v20, %s1161_s13  ;;  %v278_v19 = vmul.f32 %v277_v10, %v1206_v0  ;;  %v279_v20 = vmul.f32 %v277_v10, %v1253_v24  ;;  %v584_v22 = vmul.f32 %v583_v63, %v1206_v0  ;;  %v595_v40 = vrot.slane %v586_v14, 1 }
  0x3f   :  { %v289_v23 = vrot.slane %v280_v15, 1  ;;  %v290_v25 = vrot.slane %v281_v16, 1  ;;  %v414_v30 = vmul.f32 %v410_v21, %v1242_v17  ;;  %v411_v33 = vmul.f32 %v410_v21, %v1206_v0 }
  0x40   :  { %v286_v28 = vrot.slane %v278_v19, 1  ;;  %v287_v29 = vrot.slane %v279_v20, 1  ;;  %v412_v34 = vmul.f32 %v410_v21, %v1253_v24  ;;  %v596_v41 = vrot.slane %v587_v18, 1 }
  0x41   :  { %v1319_v31 = vsel %vm152_vm0, %v289_v23, %v290_v25  ;;  %v419_v37 = vrot.slane %v411_v33, 1  ;;  %v461_v43 = vsel %vm152_vm0, %v459_v8, %v460_v12  ;;  %v592_v44 = vrot.slane %v584_v22, 1  ;;  %v1404_v33 = vld [vmem:[%s1853_s0 + $0x70] sm:$0xff] }
  0x42   :  { %270 = vrot.lane.b32.xlu1 %v265_v26, %s1161_s13  ;;  %268 = vrot.lane.b32.xlu0 %v264_v27, %s1161_s13  ;;  %v413_v26 = vmul.f32 %v410_v21, %v1211_v1  ;;  %v585_v27 = vmul.f32 %v583_v63, %v1253_v24  ;;  %v1324_v35 = vsel %vm152_vm0, %v286_v28, %v287_v29  ;;  %v420_v38 = vrot.slane %v412_v34, 1  ;;  %v1370_v63 = vld [vmem:[%s1853_s0 + $0x30] sm:$0xff] }
  0x43   :  { %v543_v47 = vstv %s1067_s6  ;;  %v597_v51 = vsel %vm152_vm0, %v595_v40, %v596_v41  ;;  %v225_v59 = vstv %s1041_s7  ;;  %v231_v60 = vstv %s1042_s8  ;;  %v1414_v40 = vld [vmem:[%s1853_s0 + $0x60] sm:$0xff]  ;;  %s1589_s6 = sld [smem:[#allocation8 + $0x1c]]  ;;  %s1591_s7 = sld [smem:[#allocation8 + $0x1b]] }
  0x44   :  { %v422_v32 = vrot.slane %v413_v26, 1  ;;  %v593_v45 = vrot.slane %v585_v27, 1  ;;  %v1334_v46 = vsel %vm152_vm0, %v419_v37, %v420_v38  ;;  %v546_v48 = vmul.f32 %v543_v47, %v1211_v1  ;;  %s1595_s8 = sld [smem:[#allocation8 + $0x4]] }
  0x45   :  { %v547_v49 = vmul.f32 %v543_v47, %v1242_v17  ;;  %v544_v50 = vmul.f32 %v543_v47, %v1206_v0  ;;  %v545_v52 = vmul.f32 %v543_v47, %v1253_v24  ;;  %v1363_v24 = vld [vmem:[%s1853_s0 + $0x20] sm:$0xff]  ;;  %v117_v8 = vstv %s1354_s11  ;;  %s1522_s11 = sld [smem:[#allocation6 + $0x1]] }
  0x46   :  { %403 = vrot.lane.b32.xlu1 %v398_v36, %s1161_s13  ;;  %401 = vrot.lane.b32.xlu0 %v397_v39, %s1161_s13  ;;  %v423_v36 = vrot.slane %v414_v30, 1  ;;  %v464_v39 = vsel %vm152_vm0, %v462_v5, %v463_v7  ;;  %v555_v54 = vrot.slane %v546_v48, 1  ;;  %v232_v2 = vmul.f32 %v1363_v24, %v231_v60 }
  0x47   :  { %v556_v55 = vrot.slane %v547_v49, 1  ;;  %v552_v56 = vrot.slane %v544_v50, 1  ;;  %v553_v57 = vrot.slane %v545_v52, 1  ;;  %v251_v7 = vstv %s1352_s10  ;;  %v1435_v52 = vld [vmem:[%s1853_s0 + $0x28] sm:$0x1]  ;;  %s1490_s10 = sld [smem:[#allocation6]] }
  0x48   :  { %v227_v10 = vmul.f32 %v225_v59, %v1211_v1  ;;  %v233_v12 = vmul.f32 %v1370_v63, %v231_v60  ;;  %v358_v16 = vstv %s1356_s12  ;;  %v364_v18 = vstv %s1358_s14  ;;  %s1528_s12 = sld [smem:[#allocation6 + $0x2]]  ;;  %s1163_s14 = smov 1  }
  0x49   :  { %v1346_v58 = vsel %vm152_vm0, %v555_v54, %v556_v55  ;;  %v1350_v17 = vsel %vm152_vm0, %v552_v56, %v553_v57  ;;  %v252_v20 = vmul.f32 %v1231_v13, %v251_v7  ;;  %v118_v22 = vmul.f32 %v1231_v13, %v117_v8 }
  0x4a   :  { %201 = vrot.lane.b32.xlu1 %v198_v42, %s1161_s13  ;;  %199 = vrot.lane.b32.xlu0 %v195_v53, %s1161_s13  ;;  %v1330_v42 = vsel %vm152_vm0, %v422_v32, %v423_v36  ;;  %v594_v53 = vsel %vm152_vm0, %v592_v44, %v593_v45  ;;  %v360_v23 = vmul.f32 %v358_v16, %v1211_v1  ;;  %v384_v26 = vstv %s1365_s17  ;;  %s1546_s17 = sld [smem:[#allocation8 + $0x8]] }
  0x4b   :  { %v366_v25 = vmul.f32 %v1370_v63, %v364_v18  ;;  %v235_v28 = vadd.f32 %v233_v12, %v227_v10  ;;  %v253_v29 = vmul.f32 %v1226_v11, %v251_v7  ;;  %v119_v32 = vmul.f32 %v1226_v11, %v117_v8 }
  0x4c   :  { %v359_v37 = vmul.f32 %v358_v16, %v1206_v0  ;;  %v365_v38 = vmul.f32 %v1363_v24, %v364_v18  ;;  %v491_v44 = vstv %s1378_s21  ;;  %v164_v45 = vstv %s1380_s22  ;;  %s1554_s21 = sld [smem:[#allocation8 + $0x5]]  ;;  %s1556_s22 = sld [smem:[#allocation8]] }
  0x4d   :  { %v368_v48 = vadd.f32 %v366_v25, %v360_v23  ;;  %v385_v49 = vmul.f32 %v1231_v13, %v384_v26  ;;  %v497_v56 = vstv %s1390_s23  ;;  %v517_v57 = vstv %s1392_s24  ;;  %s1560_s23 = sld [smem:[#allocation8 + $0xa]]  ;;  %s1562_s24 = sld [smem:[#allocation8 + $0x3]] }
  0x4e   :  { %536 = vrot.lane.b32.xlu1 %v531_v61, %s1161_s13  ;;  %534 = vrot.lane.b32.xlu0 %v530_v62, %s1161_s13  ;;  %v91_v61 = vstv %s90_s9  ;;  %v97_v62 = vstv %s1033_s3  ;;  %v166_v7 = vmul.f32 %v1435_v52, %v164_v45  ;;  %v499_v10 = vmul.f32 %v1370_v63, %v497_v56  ;;  %s1455_s9 = sld [smem:[#allocation4 + $0x1f]]  ;;  %s1466_s3 = sld [smem:[#allocation4 + $0x22]] }
  0x4f   :  { %v92_v5 = vmul.f32 %v91_v61, %v1206_v0  ;;  %v93_v14 = vmul.f32 %v91_v61, %v1211_v1  ;;  %v99_v15 = vmul.f32 %v1370_v63, %v97_v62  ;;  %v367_v61 = vadd.f32 %v365_v38, %v359_v37 }
  0x50   :  { %v519_v12 = vmul.f32 %v1226_v11, %v517_v57  ;;  %v498_v16 = vmul.f32 %v1363_v24, %v497_v56  ;;  %v518_v18 = vmul.f32 %v1231_v13, %v517_v57  ;;  %v390_v23 = vstv %s1418_s29  ;;  %s1584_s29 = sld [smem:[#allocation8 + $0x1d]] }
  0x51   :  { %v101_v30 = vadd.f32 %v99_v15, %v93_v14  ;;  %v492_v14 = vmul.f32 %v491_v44, %v1206_v0 }
  0x52   :  { %334 = vrot.lane.b32.xlu1 %v331_v3, %s1161_s13  ;;  %332 = vrot.lane.b32.xlu0 %v328_v4, %s1161_s13  ;;  %v226_v3 = vmul.f32 %v225_v59, %v1206_v0  ;;  %v98_v4 = vmul.f32 %v1363_v24, %v97_v62  ;;  %v493_v62 = vmul.f32 %v491_v44, %v1211_v1  ;;  %v174_v0 = vrot.slane %v166_v7, 1 }
  0x54   :  { %v234_v19 = vadd.f32 %v232_v2, %v226_v3  ;;  %v100_v21 = vadd.f32 %v98_v4, %v92_v5  ;;  %v167_v2 = vmul.f32 %v1370_v63, %v164_v45  ;;  %v165_v5 = vmul.f32 %v1363_v24, %v164_v45 }
  0x55   :  { %v501_v44 = vadd.f32 %v499_v10, %v493_v62  ;;  %v523_v10 = vstv %s1455_s9  ;;  %s1599_s9 = sld [smem:[#allocation8 + $0x15]] }
  0x56   :  { %467 = vrot.lane.b32.xlu1 %v464_v39, %s1161_s13  ;;  %465 = vrot.lane.b32.xlu0 %v461_v43, %s1161_s13  ;;  %v123_v39 = vstv %s1374_s20  ;;  %v386_v43 = vmul.f32 %v1226_v11, %v384_v26  ;;  %v176_v25 = vrot.slane %v167_v2, 1  ;;  %s1552_s20 = sld [smem:[#allocation8 + $0x7]] }
  0x57   :  { %v125_v50 = vmul.f32 %v1404_v33, %v123_v39  ;;  %v124_v55 = vmul.f32 %v1414_v40, %v123_v39 }
  0x5a   :  { %600 = vrot.lane.b32.xlu1 %v597_v51, %s1161_s13  ;;  %598 = vrot.lane.b32.xlu0 %v594_v53, %s1161_s13  ;;  %v1430_v51 = vld [vmem:[%s1853_s0 + $0x38] sm:$0x1]  ;;  %s1448_s0 = sld [smem:[#allocation4 + $0x19]] }
  0x5b   :  { %v168_v4 = vmul.f32 %v1430_v51, %v164_v45  ;;  %v500_v45 = vadd.f32 %v498_v16, %v492_v14 }
  0x5d   :  { %v177_v11 = vrot.slane %v168_v4, 1 }
  0x60   :  { %v430_v57 = vstv %s1448_s0  ;;  %s1597_s0 = sld [smem:[#allocation8 + $0xd]] }
  0xa0   :  { %v243_v27 = vpop.permute.xlu1 %242  ;;  %v109_v36 = vpop.permute.xlu0 %108 }
  0xa1   :  { %v248_v34 = vadd.f32 %v243_v27, %v234_v19  ;;  %v114_v41 = vadd.f32 %v109_v36, %v100_v21  ;;  %v297_v19 = vstv %s1406_s2  ;;  %v173_v27 = vrot.slane %v165_v5, 1  ;;  %s1574_s2 = sld [smem:[#allocation8 + $0x14]] }
  0xa2   :  { %v298_v37 = vmul.f32 %v1363_v24, %v297_v19  ;;  %v299_v38 = vmul.f32 %v1435_v52, %v297_v19  ;;  %v391_v5 = vmul.f32 %v1414_v40, %v390_v23 }
  0xa3   :  { %v1423_v47 = vadd.f32 %v252_v20, %v248_v34  ;;  %v120_v53 = vadd.f32 %v118_v22, %v114_v41  ;;  %v257_v22 = vstv %s1416_s28  ;;  %s1581_s28 = sld [smem:[#allocation8 + $0x12]] }
  0xa4   :  { %v245_v54 = vpop.permute.xlu1 %244  ;;  %v111_v60 = vpop.permute.xlu0 %110  ;;  %v306_v62 = vrot.slane %v298_v37, 1  ;;  %v307_v2 = vrot.slane %v299_v38, 1 }
  0xa5   :  { %v249_v59 = vadd.f32 %v245_v54, %v235_v28  ;;  %v115_v3 = vadd.f32 %v111_v60, %v101_v30  ;;  %v300_v30 = vmul.f32 %v1370_v63, %v297_v19  ;;  %v126_v36 = vadd.f32 %v124_v55, %v120_v53 }
  0xa6   :  { %v178_v53 = vsel %vm152_vm0, %v176_v25, %v177_v11  ;;  %v175_v55 = vsel %vm152_vm0, %v173_v27, %v174_v0 }
  0xa7   :  { %v255_v8 = vadd.f32 %v253_v29, %v249_v59  ;;  %v121_v1 = vadd.f32 %v119_v32, %v115_v3  ;;  %v301_v32 = vmul.f32 %v1430_v51, %v297_v19  ;;  %v309_v56 = vrot.slane %v300_v30, 1 }
  0xa8   :  { %v378_v15 = vpop.permute.xlu1 %377  ;;  %v376_v21 = vpop.permute.xlu0 %375  ;;  %v431_v19 = vmul.f32 %v1363_v24, %v430_v57  ;;  %v1162_v30 = vmov 0.0  }
  0xa9   :  { %v382_v20 = vadd.f32 %v378_v15, %v368_v48  ;;  %v381_v26 = vadd.f32 %v376_v21, %v367_v61  ;;  %v127_v29 = vadd.f32 %v125_v50, %v121_v1  ;;  %v258_v50 = vmul.f32 %v1414_v40, %v257_v22  ;;  %61 = vst.msk [vmem:[#allocation2 + $0x10] sm:$0xff] %vm57_vm1, %v1162_v30 }
  0xaa   :  { %v310_v61 = vrot.slane %v301_v32, 1  ;;  %v433_v1 = vmul.f32 %v1370_v63, %v430_v57  ;;  %v434_v15 = vmul.f32 %v1430_v51, %v430_v57  ;;  %58 = vst.msk [vmem:[#allocation2] sm:$0xff] %vm57_vm1, %v1162_v30  ;;  %63 = vst.msk [vmem:[#allocation2 + $0x20] sm:$0xff] %vm57_vm1, %v1162_v30  ;;  %v439_v32 = vrot.slane %v431_v19, 1 }
  0xab   :  { %v1457_v28 = vadd.f32 %v386_v43, %v382_v20  ;;  %v1461_v13 = vadd.f32 %v385_v49, %v381_v26  ;;  %v259_v43 = vmul.f32 %v1404_v33, %v257_v22  ;;  %v392_v49 = vmul.f32 %v1404_v33, %v390_v23  ;;  %65 = vst.msk [vmem:[#allocation2 + $0x30] sm:$0xff] %vm57_vm1, %v1162_v30 }
  0xac   :  { %v137_v34 = vpop.permute.xlu1 %136  ;;  %v135_v41 = vpop.permute.xlu0 %134  ;;  %v432_v20 = vmul.f32 %v1435_v52, %v430_v57  ;;  %v260_v23 = vadd.f32 %v258_v50, %v1423_v47  ;;  %v311_v25 = vsel %vm152_vm0, %v309_v56, %v310_v61  ;;  %v308_v26 = vsel %vm152_vm0, %v306_v62, %v307_v2  ;;  %67 = vst.msk [vmem:[#allocation2 + $0x40] sm:$0xff] %vm57_vm1, %v1162_v30 }
  0xad   :  { %v141_v39 = vadd.f32 %v137_v34, %v127_v29  ;;  %v140_v48 = vadd.f32 %v135_v41, %v126_v36  ;;  %v261_v16 = vadd.f32 %v259_v43, %v255_v8  ;;  %v442_v0 = vrot.slane %v433_v1, 1  ;;  %69 = vst.msk [vmem:[#allocation2 + $0x50] sm:$0xff] %vm57_vm1, %v1162_v30  ;;  %71 = vst.msk [vmem:[#allocation2 + $0x60] sm:$0xff] %vm57_vm1, %v1162_v30 }
  0xae   :  { %v443_v29 = vrot.slane %v434_v15, 1  ;;  %73 = vst.msk [vmem:[#allocation2 + $0x70] sm:$0xff] %vm57_vm1, %v1162_v30  ;;  %v440_v34 = vrot.slane %v432_v20, 1  ;;  %v393_v36 = vadd.f32 %v391_v5, %v1461_v13 }
  0xaf   :  { %v162_v54 = vadd.f32 %v1298_v6, %v141_v39  ;;  %v161_v59 = vadd.f32 %v1302_v9, %v140_v48  ;;  %62 = vst.msk [vmem:[#allocation2 + $0x18] sm:$0x1] %vm59_vm2, %v1162_v30  ;;  %60 = vst.msk [vmem:[#allocation2 + $0x8] sm:$0x1] %vm59_vm2, %v1162_v30  ;;  %v525_v39 = vmul.f32 %v1404_v33, %v523_v10  ;;  %v208_v33 = vstv %s1490_s10  ;;  %s1615_s10 = sld [smem:[#allocation8 + $0x1e]] }
  0xb0   :  { %v511_v60 = vpop.permute.xlu1 %510  ;;  %v509_v4 = vpop.permute.xlu0 %508  ;;  %64 = vst.msk [vmem:[#allocation2 + $0x28] sm:$0x1] %vm59_vm2, %v1162_v30  ;;  %66 = vst.msk [vmem:[#allocation2 + $0x38] sm:$0x1] %vm59_vm2, %v1162_v30  ;;  %v444_v48 = vsel %vm152_vm0, %v442_v0, %v443_v29 }
  0xb1   :  { %v515_v3 = vadd.f32 %v511_v60, %v501_v44  ;;  %v1476_v7 = vadd.f32 %v178_v53, %v162_v54  ;;  %v514_v14 = vadd.f32 %v509_v4, %v500_v45  ;;  %v1479_v6 = vadd.f32 %v175_v55, %v161_v59  ;;  %68 = vst.msk [vmem:[#allocation2 + $0x48] sm:$0x1] %vm59_vm2, %v1162_v30 }
  0xb2   :  { %70 = vst.msk [vmem:[#allocation2 + $0x58] sm:$0x1] %vm59_vm2, %v1162_v30  ;;  %72 = vst.msk [vmem:[#allocation2 + $0x68] sm:$0x1] %vm59_vm2, %v1162_v30 }
  0xb3   :  { %v1483_v9 = vadd.f32 %v519_v12, %v515_v3  ;;  %v1487_v21 = vadd.f32 %v518_v18, %v514_v14  ;;  %v563_v12 = vstv %s1466_s3  ;;  %v394_v18 = vadd.f32 %v392_v49, %v1457_v28  ;;  %74 = vst.msk [vmem:[#allocation2 + $0x78] sm:$0x1] %vm59_vm2, %v1162_v30  ;;  %s1601_s3 = sld [smem:[#allocation8 + $0x16]] }
  0xb4   :  { %v271_v22 = vpop.permute.xlu1 %270  ;;  %v269_v27 = vpop.permute.xlu0 %268  ;;  %v566_v44 = vmul.f32 %v1370_v63, %v563_v12  ;;  %v567_v50 = vmul.f32 %v1430_v51, %v563_v12  ;;  %v441_v49 = vsel %vm152_vm0, %v439_v32, %v440_v34  ;;  %v564_v13 = vmul.f32 %v1363_v24, %v563_v12 }
  0xb5   :  { %v275_v11 = vadd.f32 %v271_v22, %v261_v16  ;;  %v274_v8 = vadd.f32 %v269_v27, %v260_v23  ;;  %v565_v53 = vmul.f32 %v1435_v52, %v563_v12  ;;  %v524_v63 = vmul.f32 %v1414_v40, %v523_v10 }
  0xb6   :  { %v575_v60 = vrot.slane %v566_v44, 1  ;;  %v576_v24 = vrot.slane %v567_v50, 1  ;;  %v527_v52 = vadd.f32 %v525_v39, %v1483_v9  ;;  %v341_v16 = vstv %s1522_s11  ;;  %s1617_s11 = sld [smem:[#allocation8 + $0x1f]] }
  0xb7   :  { %v295_v47 = vadd.f32 %v1319_v31, %v275_v11  ;;  %v294_v31 = vadd.f32 %v1324_v35, %v274_v8  ;;  %v573_v62 = vrot.slane %v565_v53, 1  ;;  %v526_v40 = vadd.f32 %v524_v63, %v1487_v21 }
  0xb8   :  { %v404_v28 = vpop.permute.xlu1 %403  ;;  %v402_v38 = vpop.permute.xlu0 %401  ;;  %v474_v11 = vstv %s1528_s12  ;;  %v678_v63 = vstv %s1550_s19  ;;  %s1691_s12 = sld [smem:[#allocation8 + $0x10]]  ;;  %s1750_s19 = sld [smem:[#allocation8 + $0x23]] }
  0xb9   :  { %v408_v37 = vadd.f32 %v404_v28, %v394_v18  ;;  %v315_v41 = vadd.f32 %v311_v25, %v295_v47  ;;  %v407_v45 = vadd.f32 %v402_v38, %v393_v36  ;;  %v314_v43 = vadd.f32 %v308_v26, %v294_v31 }
  0xba   :  { %v607_v18 = vstv %s1070_s15  ;;  %s1701_s15 = sld [smem:[#allocation8 + $0x1a]] }
  0xbb   :  { %v428_v35 = vadd.f32 %v1330_v42, %v408_v37  ;;  %v427_v54 = vadd.f32 %v1334_v46, %v407_v45  ;;  %v572_v46 = vrot.slane %v564_v13, 1 }
  0xbc   :  { %v202_v55 = vpop.permute.xlu1 %201  ;;  %v200_v51 = vpop.permute.xlu0 %199 }
  0xbd   :  { %v206_v56 = vadd.f32 %v202_v55, %v1476_v7  ;;  %v448_v57 = vadd.f32 %v444_v48, %v428_v35  ;;  %v205_v42 = vadd.f32 %v200_v51, %v1479_v6  ;;  %v447_v59 = vadd.f32 %v441_v49, %v427_v54 }
  0xbe   :  { %v577_v6 = vsel %vm152_vm0, %v575_v60, %v576_v24  ;;  %v574_v15 = vsel %vm152_vm0, %v572_v46, %v573_v62  ;;  %v664_v48 = vstv %s1074_s16  ;;  %v640_v46 = vstv %s1556_s22  ;;  %s1711_s16 = sld [smem:[#allocation8 + $0x19]] }
  0xbf   :  { %v210_v61 = vadd.f32 %v208_v33, %v206_v56  ;;  %v209_v2 = vadd.f32 %v208_v33, %v205_v42  ;;  %v817_v42 = vstv %s1548_s18  ;;  %v646_v62 = vstv %s1570_s26  ;;  %s1737_s18 = sld [smem:[#allocation8 + $0x22]] }
  0xc0   :  { %v537_v3 = vpop.permute.xlu1 %536  ;;  %v535_v7 = vpop.permute.xlu0 %534 }
  0xc1   :  { %v212_v4 = vmax.f32 %v210_v61, 0.0  ;;  %v541_v5 = vadd.f32 %v537_v3, %v527_v52  ;;  %v211_v10 = vmax.f32 %v209_v2, 0.0  ;;  %v540_v14 = vadd.f32 %v535_v7, %v526_v40 }
  0xc2   :  { %v906_v52 = vstv %s1554_s21  ;;  %v692_v3 = vstv %s1574_s2  ;;  %v823_v40 = vstv %s1560_s23  ;;  %v758_v7 = vstv %s1568_s25  ;;  %s1079_s23 = sld [smem:[#allocation8 + $0xf]]  ;;  %s1081_s25 = sld [smem:[#allocation8 + $0x21]] }
  0xc3   :  { %v561_v1 = vadd.f32 %v1346_v58, %v541_v5  ;;  %217 = vrot.lane.b32.xlu1 %v212_v4, %s1163_s14  ;;  %v560_v9 = vadd.f32 %v1350_v17, %v540_v14  ;;  %215 = vrot.lane.b32.xlu0 %v211_v10, %s1163_s14  ;;  %v882_v4 = vstv %s1562_s24  ;;  %v829_v5 = vstv %s1579_s27  ;;  %s1080_s24 = sld [smem:[#allocation8 + $0x18]] }
  0xc4   :  { %v335_v19 = vpop.permute.xlu1 %334  ;;  %v333_v21 = vpop.permute.xlu0 %332  ;;  %v920_v10 = vstv %s1576_s1 }
  0xc5   :  { %v339_v20 = vadd.f32 %v335_v19, %v315_v41  ;;  %v581_v22 = vadd.f32 %v577_v6, %v561_v1  ;;  %v338_v23 = vadd.f32 %v333_v21, %v314_v43  ;;  %v580_v25 = vadd.f32 %v574_v15, %v560_v9 }
  0xc6   :  { %v652_v1 = vstv %s1581_s28  ;;  %v888_v9 = vstv %s1586_s30  ;;  %v835_v21 = vstv %s1589_s6 }
  0xc7   :  { %v343_v26 = vadd.f32 %v341_v16, %v339_v20  ;;  %v342_v58 = vadd.f32 %v341_v16, %v338_v23  ;;  %v706_v20 = vstv %s1584_s29 }
  0xc8   :  { %v468_v27 = vpop.permute.xlu1 %467  ;;  %v466_v0 = vpop.permute.xlu0 %465 }
  0xc9   :  { %v345_v12 = vmax.f32 %v343_v26, 0.0  ;;  %v472_v8 = vadd.f32 %v468_v27, %v448_v57  ;;  %v344_v29 = vmax.f32 %v342_v58, 0.0  ;;  %v471_v30 = vadd.f32 %v466_v0, %v447_v59 }
  0xca   :  { %v744_v57 = vstv %s1546_s17  ;;  %v841_v59 = vstv %s1552_s20  ;;  %v991_v0 = vstv %s1601_s3  ;;  %s1722_s17 = sld [smem:[#allocation8 + $0x17]]  ;;  %s1103_s20 = sld [smem:[#allocation8 + $0x20]] }
  0xcb   :  { %v476_v17 = vadd.f32 %v474_v11, %v472_v8  ;;  %350 = vrot.lane.b32.xlu1 %v345_v12, %s1163_s14  ;;  %v475_v47 = vadd.f32 %v474_v11, %v471_v30  ;;  %348 = vrot.lane.b32.xlu0 %v344_v29, %s1163_s14  ;;  %v979_v11 = vstv %s1595_s8  ;;  %v894_v12 = vstv %s1599_s9 }
  0xcc   :  { %v601_v32 = vpop.permute.xlu1 %600  ;;  %v599_v28 = vpop.permute.xlu0 %598  ;;  %v985_v8 = vstv %s1597_s0 }
  0xcd   :  { %v478_v34 = vmax.f32 %v476_v17, 0.0  ;;  %v605_v31 = vadd.f32 %v601_v32, %v581_v22  ;;  %v477_v36 = vmax.f32 %v475_v47, 0.0  ;;  %v604_v37 = vadd.f32 %v599_v28, %v580_v25 }
  0xce   :  { %v658_v22 = vstv %s1591_s7  ;;  %v900_v28 = vstv %s1615_s10 }
  0xcf   :  { %v609_v38 = vadd.f32 %v607_v18, %v605_v31  ;;  %483 = vrot.lane.b32.xlu1 %v478_v34, %s1163_s14  ;;  %v608_v39 = vadd.f32 %v607_v18, %v604_v37  ;;  %481 = vrot.lane.b32.xlu0 %v477_v36, %s1163_s14  ;;  %v997_v36 = vstv %s1617_s11 }
  0xd1   :  { %v611_v41 = vmax.f32 %v609_v38, 0.0  ;;  %v610_v44 = vmax.f32 %v608_v39, 0.0 }
  0xd3   :  { %616 = vrot.lane.b32.xlu1 %v611_v41, %s1163_s14  ;;  %614 = vrot.lane.b32.xlu0 %v610_v44, %s1163_s14 }
 0x135   :  { %v218_v45 = vpop.permute.xlu1 %217  ;;  %v216_v43 = vpop.permute.xlu0 %215 }
 0x136   :  { %223 = vst.msk [vmem:[#allocation2 + $0x11] sm:$0xff] %vm221_vm3, %v218_v45  ;;  %222 = vst.msk [vmem:[#allocation2 + $0x1] sm:$0xff] %vm221_vm3, %v216_v43 }
 0x13d   :  { %v351_v50 = vpop.permute.xlu1 %350  ;;  %v1558_v35 = vld [vmem:[#allocation2 + $0x11] sm:$0xff]  ;;  %v349_v49 = vpop.permute.xlu0 %348  ;;  %v1566_v53 = vld [vmem:[#allocation2 + $0x1] sm:$0xff] }
 0x13e   :  { %356 = vst.msk [vmem:[#allocation2 + $0x31] sm:$0xff] %vm221_vm3, %v351_v50  ;;  %v666_v13 = vmul.f32 %v664_v48, %v1558_v35  ;;  %355 = vst.msk [vmem:[#allocation2 + $0x21] sm:$0xff] %vm221_vm3, %v349_v49  ;;  %v665_v54 = vmul.f32 %v664_v48, %v1566_v53  ;;  %v1642_v25 = vld [vmem:[#allocation2 + $0x10] sm:$0xff]  ;;  %v642_v26 = vmul.f32 %v640_v46, %v1558_v35  ;;  %v1648_v27 = vld [vmem:[#allocation2] sm:$0xff] }
 0x13f   :  { %v641_v58 = vmul.f32 %v640_v46, %v1566_v53  ;;  %v746_v31 = vmul.f32 %v744_v57, %v1642_v25  ;;  %v819_v38 = vmul.f32 %v817_v42, %v1558_v35  ;;  %v745_v41 = vmul.f32 %v744_v57, %v1648_v27 }
 0x140   :  { %671 = vrot.lane.b32.xlu1 %v666_v13, %s1163_s14  ;;  %669 = vrot.lane.b32.xlu0 %v665_v54, %s1163_s14  ;;  %v818_v44 = vmul.f32 %v817_v42, %v1566_v53  ;;  %v908_v43 = vmul.f32 %v906_v52, %v1558_v35 }
 0x141   :  { %v484_v33 = vpop.permute.xlu1 %483  ;;  %v482_v55 = vpop.permute.xlu0 %481 }
 0x142   :  { %489 = vst.msk [vmem:[#allocation2 + $0x51] sm:$0xff] %vm221_vm3, %v484_v33  ;;  %488 = vst.msk [vmem:[#allocation2 + $0x41] sm:$0xff] %vm221_vm3, %v482_v55  ;;  %v907_v33 = vmul.f32 %v906_v52, %v1566_v53  ;;  %v884_v55 = vmul.f32 %v882_v4, %v1558_v35 }
 0x145   :  { %v617_v56 = vpop.permute.xlu1 %616  ;;  %v1603_v51 = vld [vmem:[#allocation2 + $0x31] sm:$0xff]  ;;  %v615_v60 = vpop.permute.xlu0 %614  ;;  %v1610_v61 = vld [vmem:[#allocation2 + $0x21] sm:$0xff] }
 0x146   :  { %622 = vst.msk [vmem:[#allocation2 + $0x71] sm:$0xff] %vm221_vm3, %v617_v56  ;;  %v680_v24 = vmul.f32 %v678_v63, %v1603_v51  ;;  %621 = vst.msk [vmem:[#allocation2 + $0x61] sm:$0xff] %vm221_vm3, %v615_v60  ;;  %v679_v2 = vmul.f32 %v678_v63, %v1610_v61  ;;  %v648_v6 = vmul.f32 %v646_v62, %v1603_v51 }
 0x147   :  { %v647_v15 = vmul.f32 %v646_v62, %v1610_v61  ;;  %v825_v39 = vmul.f32 %v823_v40, %v1603_v51  ;;  %v824_v45 = vmul.f32 %v823_v40, %v1610_v61  ;;  %v883_v63 = vmul.f32 %v882_v4, %v1566_v53 }
 0x148   :  { %685 = vrot.lane.b32.xlu1 %v680_v24, %s1163_s14  ;;  %683 = vrot.lane.b32.xlu0 %v679_v2, %s1163_s14  ;;  %v650_v17 = vadd.f32 %v648_v6, %v642_v26  ;;  %v981_v56 = vmul.f32 %v979_v11, %v1558_v35  ;;  %v980_v24 = vmul.f32 %v979_v11, %v1566_v53 }
 0x149   :  { %v1629_v14 = vld [vmem:[#allocation2 + $0x51] sm:$0xff]  ;;  %v1636_v19 = vld [vmem:[#allocation2 + $0x41] sm:$0xff]  ;;  %v649_v18 = vadd.f32 %v647_v15, %v641_v58  ;;  %v827_v57 = vadd.f32 %v825_v39, %v819_v38  ;;  %v826_v46 = vadd.f32 %v824_v45, %v818_v44  ;;  %v890_v52 = vmul.f32 %v888_v9, %v1603_v51 }
 0x14a   :  { %v694_v16 = vmul.f32 %v692_v3, %v1629_v14  ;;  %v693_v23 = vmul.f32 %v692_v3, %v1636_v19  ;;  %v654_v30 = vmul.f32 %v652_v1, %v1629_v14  ;;  %v653_v47 = vmul.f32 %v652_v1, %v1636_v19 }
 0x14b   :  { %v831_v50 = vmul.f32 %v829_v5, %v1629_v14  ;;  %v830_v62 = vmul.f32 %v829_v5, %v1636_v19  ;;  %v896_v2 = vmul.f32 %v894_v12, %v1629_v14  ;;  %v889_v35 = vmul.f32 %v888_v9, %v1610_v61 }
 0x14c   :  { %699 = vrot.lane.b32.xlu1 %v694_v16, %s1163_s14  ;;  %697 = vrot.lane.b32.xlu0 %v693_v23, %s1163_s14  ;;  %v656_v49 = vadd.f32 %v654_v30, %v650_v17  ;;  %v655_v54 = vadd.f32 %v653_v47, %v649_v18  ;;  %v895_v53 = vmul.f32 %v894_v12, %v1636_v19  ;;  %v1699_v16 = vld [vmem:[#allocation2 + $0x30] sm:$0xff]  ;;  %v1706_v23 = vld [vmem:[#allocation2 + $0x20] sm:$0xff]  ;;  %v847_v44 = vstv %s1691_s12 }
 0x14d   :  { %v1654_v29 = vld [vmem:[#allocation2 + $0x71] sm:$0xff]  ;;  %v1659_v34 = vld [vmem:[#allocation2 + $0x61] sm:$0xff]  ;;  %v833_v3 = vadd.f32 %v831_v50, %v827_v57  ;;  %v892_v4 = vadd.f32 %v890_v52, %v884_v55  ;;  %v987_v5 = vmul.f32 %v985_v8, %v1603_v51  ;;  %v993_v1 = vmul.f32 %v991_v0, %v1629_v14 }
 0x14e   :  { %v708_v32 = vmul.f32 %v706_v20, %v1654_v29  ;;  %v707_v37 = vmul.f32 %v706_v20, %v1659_v34  ;;  %v660_v48 = vmul.f32 %v658_v22, %v1654_v29  ;;  %v659_v13 = vmul.f32 %v658_v22, %v1659_v34 }
 0x14f   :  { %v837_v40 = vmul.f32 %v835_v21, %v1654_v29  ;;  %v902_v6 = vmul.f32 %v900_v28, %v1654_v29  ;;  %v836_v15 = vmul.f32 %v835_v21, %v1659_v34  ;;  %v891_v20 = vadd.f32 %v889_v35, %v883_v63 }
 0x150   :  { %713 = vrot.lane.b32.xlu1 %v708_v32, %s1163_s14  ;;  %711 = vrot.lane.b32.xlu0 %v707_v37, %s1163_s14  ;;  %v1680_v42 = vadd.f32 %v660_v48, %v656_v49  ;;  %v1682_v60 = vadd.f32 %v659_v13, %v655_v54  ;;  %v901_v22 = vmul.f32 %v900_v28, %v1659_v34  ;;  %v1747_v49 = vld [vmem:[#allocation2 + $0x50] sm:$0xff]  ;;  %v1754_v54 = vld [vmem:[#allocation2 + $0x40] sm:$0xff]  ;;  %v934_v63 = vstv %s1722_s17 }
 0x151   :  { %v986_v9 = vmul.f32 %v985_v8, %v1610_v61  ;;  %v898_v26 = vadd.f32 %v896_v2, %v892_v4  ;;  %v989_v58 = vadd.f32 %v987_v5, %v981_v56  ;;  %v999_v11 = vmul.f32 %v997_v36, %v1654_v29  ;;  %v1770_v2 = vld [vmem:[#allocation2 + $0x60] sm:$0xff] }
 0x152   :  { %v992_v21 = vmul.f32 %v991_v0, %v1636_v19  ;;  %v832_v12 = vadd.f32 %v830_v62, %v826_v46  ;;  %v897_v30 = vadd.f32 %v895_v53, %v891_v20  ;;  %v998_v17 = vmul.f32 %v997_v36, %v1659_v34  ;;  %v1766_v46 = vld [vmem:[#allocation2 + $0x70] sm:$0xff] }
 0x153   :  { %v988_v8 = vadd.f32 %v986_v9, %v980_v24  ;;  %v839_v47 = vadd.f32 %v837_v40, %v833_v3  ;;  %v760_v18 = vmul.f32 %v758_v7, %v1699_v16  ;;  %v1717_v32 = vadd.f32 %v902_v6, %v898_v26 }
 0x154   :  { %751 = vrot.lane.b32.xlu1 %v746_v31, %s1163_s14  ;;  %749 = vrot.lane.b32.xlu0 %v745_v41, %s1163_s14  ;;  %v995_v0 = vadd.f32 %v993_v1, %v989_v58  ;;  %v838_v31 = vadd.f32 %v836_v15, %v832_v12  ;;  %v759_v28 = vmul.f32 %v758_v7, %v1706_v23  ;;  %v859_v62 = vstv %s1737_s18 }
 0x155   :  { %v1724_v37 = vadd.f32 %v901_v22, %v897_v30  ;;  %v994_v38 = vadd.f32 %v992_v21, %v988_v8  ;;  %v843_v36 = vmul.f32 %v841_v59, %v1642_v25  ;;  %v842_v41 = vmul.f32 %v841_v59, %v1648_v27 }
 0x156   :  { %v1730_v39 = vadd.f32 %v999_v11, %v995_v0  ;;  %v921_v50 = vmul.f32 %v920_v10, %v1610_v61  ;;  %v772_v59 = vstv %s1701_s15  ;;  %v849_v13 = vmul.f32 %v847_v44, %v1699_v16 }
 0x157   :  { %v1739_v7 = vadd.f32 %v998_v17, %v994_v38  ;;  %v845_v45 = vadd.f32 %v843_v36, %v839_v47  ;;  %v844_v48 = vadd.f32 %v842_v41, %v838_v31  ;;  %v774_v55 = vmul.f32 %v772_v59, %v1747_v49 }
 0x158   :  { %913 = vrot.lane.b32.xlu1 %v908_v43, %s1163_s14  ;;  %911 = vrot.lane.b32.xlu0 %v907_v33, %s1163_s14  ;;  %v922_v43 = vmul.f32 %v920_v10, %v1603_v51  ;;  %v848_v33 = vmul.f32 %v847_v44, %v1706_v23  ;;  %v853_v51 = vstv %s1711_s16  ;;  %v773_v10 = vmul.f32 %v772_v59, %v1754_v54 }
 0x159   :  { %v851_v61 = vadd.f32 %v849_v13, %v845_v45  ;;  %v855_v57 = vmul.f32 %v853_v51, %v1747_v49  ;;  %v854_v24 = vmul.f32 %v853_v51, %v1754_v54  ;;  %v936_v52 = vmul.f32 %v934_v63, %v1629_v14 }
 0x15a   :  { %v850_v56 = vadd.f32 %v848_v33, %v844_v48  ;;  %v935_v40 = vmul.f32 %v934_v63, %v1636_v19  ;;  %v786_v35 = vstv %s1750_s19  ;;  %v861_v4 = vmul.f32 %v859_v62, %v1766_v46 }
 0x15b   :  { %v857_v3 = vadd.f32 %v855_v57, %v851_v61  ;;  %v860_v6 = vmul.f32 %v859_v62, %v1770_v2  ;;  %v788_v5 = vmul.f32 %v786_v35, %v1766_v46  ;;  %v787_v14 = vmul.f32 %v786_v35, %v1770_v2 }
 0x15c   :  { %765 = vrot.lane.b32.xlu1 %v760_v18, %s1163_s14  ;;  %763 = vrot.lane.b32.xlu0 %v759_v28, %s1163_s14  ;;  %v856_v53 = vadd.f32 %v854_v24, %v850_v56  ;;  %v948_v15 = vstv %s1103_s20  ;;  %v1785_v19 = vstv %s1857_s4  ;;  %s1078_s4 = sld [smem:[#allocation8 + $0x6]] }
 0x15d   :  { %v863_v1 = vadd.f32 %v861_v4, %v857_v3  ;;  %v950_v22 = vmul.f32 %v948_v15, %v1654_v29  ;;  %v949_v26 = vmul.f32 %v948_v15, %v1659_v34  ;;  %v726_v41 = vstv %s1079_s23 }
 0x15e   :  { %v862_v20 = vadd.f32 %v860_v6, %v856_v53  ;;  %v727_v33 = vmul.f32 %v726_v41, %v1706_v23 }
 0x15f   :  { %v867_v9 = vadd.f32 %v863_v1, %v1785_v19 }
 0x160   :  { %927 = vrot.lane.b32.xlu1 %v922_v43, %s1163_s14  ;;  %925 = vrot.lane.b32.xlu0 %v921_v50, %s1163_s14  ;;  %v866_v58 = vadd.f32 %v862_v20, %v1785_v19 }
 0x161   :  { %v869_v11 = vmax.f32 %v867_v9, 0.0 }
 0x162   :  { %v868_v21 = vmax.f32 %v866_v58, 0.0  ;;  %v720_v28 = vstv %s1078_s4 }
 0x163   :  { %v722_v43 = vmul.f32 %v720_v28, %v1642_v25  ;;  %v721_v59 = vmul.f32 %v720_v28, %v1648_v27 }
 0x164   :  { %779 = vrot.lane.b32.xlu1 %v774_v55, %s1163_s14  ;;  %777 = vrot.lane.b32.xlu0 %v773_v10, %s1163_s14  ;;  %v738_v55 = vstv %s1081_s25 }
 0x165   :  { %v740_v24 = vmul.f32 %v738_v55, %v1766_v46  ;;  %v739_v27 = vmul.f32 %v738_v55, %v1770_v2 }
 0x168   :  { %941 = vrot.lane.b32.xlu1 %v936_v52, %s1163_s14  ;;  %939 = vrot.lane.b32.xlu0 %v935_v40, %s1163_s14 }
 0x16c   :  { %793 = vrot.lane.b32.xlu1 %v788_v5, %s1163_s14  ;;  %791 = vrot.lane.b32.xlu0 %v787_v14, %s1163_s14 }
 0x170   :  { %955 = vrot.lane.b32.xlu1 %v950_v22, %s1163_s14  ;;  %953 = vrot.lane.b32.xlu0 %v949_v26, %s1163_s14 }
 0x174   :  { %874 = vrot.lane.b32.xlu1 %v869_v11, %s1161_s13  ;;  %872 = vrot.lane.b32.xlu0 %v868_v21, %s1161_s13 }
 0x1b2   :  { %v672_v12 = vpop.permute.xlu1 %671  ;;  %v670_v30 = vpop.permute.xlu0 %669 }
 0x1b3   :  { %v676_v34 = vadd.f32 %v672_v12, %v1680_v42  ;;  %v675_v17 = vadd.f32 %v670_v30, %v1682_v60  ;;  %v732_v42 = vstv %s1080_s24  ;;  %v728_v60 = vmul.f32 %v726_v41, %v1699_v16 }
 0x1b4   :  { %v734_v63 = vmul.f32 %v732_v42, %v1747_v49  ;;  %v733_v25 = vmul.f32 %v732_v42, %v1754_v54 }
 0x1ba   :  { %v686_v29 = vpop.permute.xlu1 %685  ;;  %v684_v8 = vpop.permute.xlu0 %683 }
 0x1bb   :  { %v690_v18 = vadd.f32 %v686_v29, %v676_v34  ;;  %v689_v31 = vadd.f32 %v684_v8, %v675_v17 }
 0x1be   :  { %v700_v47 = vpop.permute.xlu1 %699  ;;  %v698_v0 = vpop.permute.xlu0 %697 }
 0x1bf   :  { %v704_v38 = vadd.f32 %v700_v47, %v690_v18  ;;  %v703_v36 = vadd.f32 %v698_v0, %v689_v31 }
 0x1c2   :  { %v714_v44 = vpop.permute.xlu1 %713  ;;  %v712_v48 = vpop.permute.xlu0 %711 }
 0x1c3   :  { %v718_v45 = vadd.f32 %v714_v44, %v704_v38  ;;  %v717_v50 = vadd.f32 %v712_v48, %v703_v36 }
 0x1c5   :  { %v724_v13 = vadd.f32 %v722_v43, %v718_v45  ;;  %v723_v51 = vadd.f32 %v721_v59, %v717_v50  ;;  %v1005_v43 = vadd.f32 %v1730_v39, %v1785_v19  ;;  %v1004_v50 = vadd.f32 %v1739_v7, %v1785_v19 }
 0x1c6   :  { %v752_v61 = vpop.permute.xlu1 %751  ;;  %v750_v56 = vpop.permute.xlu0 %749 }
 0x1c7   :  { %v730_v10 = vadd.f32 %v728_v60, %v724_v13  ;;  %v729_v57 = vadd.f32 %v727_v33, %v723_v51  ;;  %v1007_v59 = vmax.f32 %v1005_v43, 0.0  ;;  %v1006_v42 = vmax.f32 %v1004_v50, 0.0 }
 0x1c9   :  { %v736_v62 = vadd.f32 %v734_v63, %v730_v10  ;;  %v735_v52 = vadd.f32 %v733_v25, %v729_v57 }
 0x1ca   :  { %v914_v16 = vpop.permute.xlu1 %913  ;;  %v912_v40 = vpop.permute.xlu0 %911 }
 0x1cb   :  { %v742_v3 = vadd.f32 %v740_v24, %v736_v62  ;;  %v741_v23 = vadd.f32 %v739_v27, %v735_v52  ;;  %v918_v46 = vadd.f32 %v914_v16, %v1717_v32  ;;  %v917_v20 = vadd.f32 %v912_v40, %v1724_v37 }
 0x1cd   :  { %v756_v14 = vadd.f32 %v752_v61, %v742_v3  ;;  %v755_v54 = vadd.f32 %v750_v56, %v741_v23 }
 0x1ce   :  { %v766_v35 = vpop.permute.xlu1 %765  ;;  %v764_v53 = vpop.permute.xlu0 %763 }
 0x1cf   :  { %v770_v22 = vadd.f32 %v766_v35, %v756_v14  ;;  %v769_v58 = vadd.f32 %v764_v53, %v755_v54 }
 0x1d2   :  { %v928_v4 = vpop.permute.xlu1 %927  ;;  %v926_v6 = vpop.permute.xlu0 %925 }
 0x1d3   :  { %v932_v9 = vadd.f32 %v928_v4, %v918_v46  ;;  %v931_v11 = vadd.f32 %v926_v6, %v917_v20 }
 0x1d6   :  { %v780_v5 = vpop.permute.xlu1 %779  ;;  %v778_v49 = vpop.permute.xlu0 %777 }
 0x1d7   :  { %v784_v21 = vadd.f32 %v780_v5, %v770_v22  ;;  %v783_v30 = vadd.f32 %v778_v49, %v769_v58 }
 0x1da   :  { %v942_v1 = vpop.permute.xlu1 %941  ;;  %v940_v15 = vpop.permute.xlu0 %939 }
 0x1db   :  { %v946_v12 = vadd.f32 %v942_v1, %v932_v9  ;;  %v945_v29 = vadd.f32 %v940_v15, %v931_v11 }
 0x1de   :  { %v794_v2 = vpop.permute.xlu1 %793  ;;  %v792_v26 = vpop.permute.xlu0 %791 }
 0x1df   :  { %v798_v34 = vadd.f32 %v794_v2, %v784_v21  ;;  %v797_v18 = vadd.f32 %v792_v26, %v783_v30 }
 0x1e1   :  { %v802_v28 = vadd.f32 %v1785_v19, %v798_v34  ;;  %v801_v41 = vadd.f32 %v1785_v19, %v797_v18 }
 0x1e2   :  { %v956_v8 = vpop.permute.xlu1 %955  ;;  %v954_v47 = vpop.permute.xlu0 %953 }
 0x1e3   :  { %v960_v17 = vadd.f32 %v956_v8, %v946_v12  ;;  %v959_v0 = vadd.f32 %v954_v47, %v945_v29  ;;  %v804_v45 = vmax.f32 %v802_v28, 0.0  ;;  %v803_v48 = vmax.f32 %v801_v41, 0.0 }
 0x1e5   :  { %v964_v32 = vadd.f32 %v960_v17, %v1785_v19  ;;  %v963_v37 = vadd.f32 %v959_v0, %v1785_v19 }
 0x1e6   :  { %v875_v31 = vpop.permute.xlu1 %874  ;;  %v873_v36 = vpop.permute.xlu0 %872 }
 0x1e7   :  { %v966_v38 = vmax.f32 %v964_v32, 0.0  ;;  %1095 = vst.msk [vmem:[%s1858_s5 + $0x18] sm:$0xff] %vm813_vm4, %v875_v31  ;;  %v965_v44 = vmax.f32 %v963_v37, 0.0  ;;  %1094 = vst.msk [vmem:[%s1858_s5 + $0x10] sm:$0xff] %vm813_vm4, %v873_v36 }
 0x1e9   :  { %971 = vrot.lane.b32.xlu1 %v966_v38, %s1161_s13  ;;  %969 = vrot.lane.b32.xlu0 %v965_v44, %s1161_s13 }
 0x1ed   :  { %809 = vrot.lane.b32.xlu1 %v804_v45, %s1161_s13  ;;  %807 = vrot.lane.b32.xlu0 %v803_v48, %s1161_s13 }
 0x1f1   :  { %1012 = vrot.lane.b32.xlu1 %v1007_v59, %s1161_s13  ;;  %1010 = vrot.lane.b32.xlu0 %v1006_v42, %s1161_s13 }
 0x25b   :  { %v972_v60 = vpop.permute.xlu1 %971  ;;  %v970_v39 = vpop.permute.xlu0 %969 }
 0x25c   :  { %1105 = vst.msk [vmem:[%s1858_s5 + $0x28] sm:$0xff] %vm813_vm4, %v972_v60  ;;  %1104 = vst.msk [vmem:[%s1858_s5 + $0x20] sm:$0xff] %vm813_vm4, %v970_v39 }
 0x25f   :  { %v810_v7 = vpop.permute.xlu1 %809  ;;  %v808_v19 = vpop.permute.xlu0 %807 }
 0x260   :  { %815 = vst.msk [vmem:[%s1858_s5 + $0x8] sm:$0xff] %vm813_vm4, %v810_v7  ;;  %814 = vst.msk [vmem:[%s1858_s5] sm:$0xff] %vm813_vm4, %v808_v19 }
 0x263   :  { %v1013_v13 = vpop.permute.xlu1 %1012  ;;  %v1011_v33 = vpop.permute.xlu0 %1010 }
 0x264   :  { %1111 = vst.msk [vmem:[%s1858_s5 + $0x38] sm:$0xff] %vm813_vm4, %v1013_v13  ;;  %1110 = vst.msk [vmem:[%s1858_s5 + $0x30] sm:$0xff] %vm813_vm4, %v1011_v33 }
 0x265   :  { %1023 = vsyncpa [#allocation5], 1 }
 0x266   :  { %1024 = vsyncpa [#allocation7], 1 }

</bundles_post_ra>
